<compile_context>
chip_gen: v6e
topology: v6e:2x2x1
jax: 0.10.0
libtpu: 0.0.40
codegen_flags: <defaults>
</compile_context>

<pallas_src>
import functools

import jax
import jax.numpy as jnp
from jax import lax
from jax.experimental import pallas as pl
from jax.experimental.pallas import tpu as pltpu


def _shift_conv_kernel(x_ref, w_ref, b_ref, o_ref, *, s1, s2, f, shift_depth,
                       compute_dtype):
    # x_ref: (1, T, C, HWt)   w_ref: (Co, C)   b_ref: (Co, 1)
    # o_ref: (1, T, Co, HWt)
    _, T, C, _ = x_ref.shape
    Co = w_ref.shape[0]

    def load_x(c0, c1):
        # Narrow channel-slab load straight from VMEM (sublane slice).
        return x_ref[0, :, c0:c1, :].astype(compute_dtype)      # (T, c1-c0, HWt)

    def load_w(c0, c1):
        return w_ref[:, c0:c1].astype(compute_dtype)            # (Co, c1-c0)

    def bdot(w_co_k, x_t_k_hw):
        # (Co, K) x (T, K, HWt) -> (T, Co, HWt), f32 accumulation on the MXU.
        w_b = jnp.broadcast_to(w_co_k[None], (T,) + w_co_k.shape)
        return lax.dot_general(
            w_b, x_t_k_hw,
            dimension_numbers=(((2,), (1,)), ((0,), (0,))),
            preferred_element_type=jnp.float32)

    def shift_fwd(slab, l):
        # shifted[t] = slab[t + l] for t in [s1, s2 - l), else slab[t].
        pieces = []
        if s1 > 0:
            pieces.append(slab[:s1])
        pieces.append(slab[s1 + l:s2])
        pieces.append(slab[s2 - l:s2])
        if s2 < T:
            pieces.append(slab[s2:])
        return jnp.concatenate(pieces, axis=0)

    def shift_bwd(slab, l):
        # shifted[t] = slab[t - l] for t in [s1 + l, s2), else slab[t].
        pieces = [slab[:s1 + l], slab[s1:s2 - l]]
        if s2 < T:
            pieces.append(slab[s2:])
        return jnp.concatenate(pieces, axis=0)

    n_shift = 2 * shift_depth * f if f > 0 else 0
    terms = []
    if n_shift < C:
        # Bulk of the contraction: the channels that are never shifted.
        terms.append(bdot(load_w(n_shift, C), load_x(n_shift, C)))
    if f > 0:
        span = s2 - s1
        for d in range(shift_depth):
            l = d + 1
            f1, f2 = 2 * d * f, (2 * d + 1) * f
            slab_a = load_x(f1, f1 + f)
            slab_b = load_x(f2, f2 + f)
            xa = shift_fwd(slab_a, l) if span > l else slab_a
            xb = shift_bwd(slab_b, l) if span > l else slab_b
            terms.append(bdot(load_w(f1, f1 + f), xa))
            terms.append(bdot(load_w(f2, f2 + f), xb))

    acc = terms[0]
    for t in terms[1:]:
        acc = acc + t
    acc = acc + b_ref[...].astype(jnp.float32)      # (Co, 1) broadcasts over HW
    o_ref[0] = acc.astype(o_ref.dtype)              # lane-dense store


def _pick_tile_hw(hw, t, c, co, itemsize, budget_bytes=16 << 20):
    """Largest HW tile (multiple of 128 dividing HW) whose double-buffered
    in+out blocks fit the VMEM budget; falls back to the full HW extent when
    HW is not a multiple of 128 (block dim must then equal the array dim)."""
    if hw % 128 != 0:
        return hw
    per_col = 2 * t * (c + co) * itemsize            # dbuf'd in + out per HW column
    cap = max(128, (budget_bytes // per_col) // 128 * 128)
    tile = min(hw, cap)
    while hw % tile != 0:
        tile -= 128
    return tile


def tempo_modal_shift_forward(x_nchw, weight, bias, *, n_segment, f_div,
                              shift_depth, shift_cfg, matmul_dtype=None,
                              tile_hw=None):
    NT, C, H, W = x_nchw.shape
    assert NT % n_segment == 0, "batch must contain whole segments"
    nb = NT // n_segment
    T = n_segment
    Co = weight.shape[0]
    assert weight.shape[1] == C and weight.shape[2:] == (1, 1), "need a 1x1 conv"
    HW = H * W

    f_n = C // f_div
    f = f_n // shift_depth if shift_depth > 0 else 0
    s1, s2 = shift_cfg
    assert 0 <= s1 <= s2 <= T, "shift window must lie inside the segment axis"
    assert 2 * shift_depth * f <= C, "shifted channel slabs exceed C"
    # NOTE: the whole temporal axis (n_segment) lives inside one block — the
    # shift only mixes T and C, so HW tiles are independent, but T must never
    # be split across the grid (no halo exchange is implemented).

    x = x_nchw.reshape(nb, T, C, HW)          # pure reshape: stays in NCHW order
    w2 = weight.reshape(Co, C)
    b2 = bias.reshape(Co, 1)

    itemsize = jnp.dtype(x.dtype).itemsize
    if tile_hw is None:
        tile_hw = _pick_tile_hw(HW, T, C, Co, itemsize)
    assert HW % tile_hw == 0 and (tile_hw % 128 == 0 or tile_hw == HW)
    n_tiles = HW // tile_hw

    in_bytes = T * C * tile_hw * itemsize
    out_bytes = T * Co * tile_hw * itemsize
    acc_bytes = T * Co * tile_hw * 4
    vmem_limit = int(min(48 << 20,
                         max(32 << 20,
                             2 * (in_bytes + out_bytes) + 4 * acc_bytes + (2 << 20))))

    compute_dtype = jnp.dtype(matmul_dtype) if matmul_dtype is not None else x.dtype
    kernel = functools.partial(_shift_conv_kernel, s1=s1, s2=s2, f=f,
                               shift_depth=shift_depth,
                               compute_dtype=compute_dtype)

    out = pl.pallas_call(
        kernel,
        out_shape=jax.ShapeDtypeStruct((nb, T, Co, HW), x.dtype),
        grid_spec=pltpu.PrefetchScalarGridSpec(
            num_scalar_prefetch=0,
            grid=(nb, n_tiles),
            in_specs=[
                pl.BlockSpec((1, T, C, tile_hw), lambda b, j: (b, 0, 0, j)),
                pl.BlockSpec((Co, C), lambda b, j: (0, 0)),   # weight resident
                pl.BlockSpec((Co, 1), lambda b, j: (0, 0)),   # bias resident
            ],
            out_specs=pl.BlockSpec((1, T, Co, tile_hw),
                                   lambda b, j: (b, 0, 0, j)),
        ),
        compiler_params=pltpu.CompilerParams(
            dimension_semantics=("parallel", "parallel"),
            vmem_limit_bytes=vmem_limit),
    )(x, w2, b2)

    return out.reshape(NT, Co, H, W)          # already NCHW: no transpose needed


def reference_forward(x_nchw, weight, bias, *, n_segment, f_div,
                      shift_depth, shift_cfg):
    """Pure-JAX replica of the PyTorch forward (shift_temporal + 1x1 conv)."""
    NT, C, H, W = x_nchw.shape
    nb = NT // n_segment
    Co = weight.shape[0]
    f_n = C // f_div
    f = f_n // shift_depth
    xr = x_nchw.reshape(nb, n_segment, C, H, W)
    out = xr
    s1, s2 = shift_cfg
    for d in range(shift_depth):
        l = d + 1
        f1 = 2 * d * f
        f2 = (2 * d + 1) * f
        out = out.at[:, s1:s2 - l, f1:f1 + f].set(xr[:, s1 + l:s2, f1:f1 + f])
        out = out.at[:, s1 + l:s2, f2:f2 + f].set(xr[:, s1:s2 - l, f2:f2 + f])
    shifted = out.reshape(NT, C, H, W)
    y = jnp.einsum('nchw,oc->nohw', shifted, weight.reshape(Co, C),
                   precision=lax.Precision.HIGHEST)
    return y + bias[None, :, None, None]


if __name__ == "__main__":
    # Module config: Conv2d(32, 32, kernel_size=1), n_video_segments=8,
    # n_motion_segments=0, n_audio_segments=0, input_mode=1, f_div=8,
    # shift_depth=2, mode="shift_temporal".
    n_video, n_motion, n_audio = 8, 0, 0
    n_segment = n_video + n_motion + n_audio
    f_div, shift_depth = 8, 2
    shift_cfg = (0, n_video + n_motion)

    C, Co, H, W = 32, 32, 16, 16
    nb = 2
    NT = nb * n_segment

    key = jax.random.PRNGKey(0)
    kx, kw, kb = jax.random.split(key, 3)
    x = jax.random.normal(kx, (NT, C, H, W), dtype=jnp.float32)
    weight = jax.random.normal(kw, (Co, C, 1, 1), dtype=jnp.float32) * 0.1
    bias = jax.random.normal(kb, (Co,), dtype=jnp.float32) * 0.1

    cfg = dict(n_segment=n_segment, f_div=f_div, shift_depth=shift_depth,
               shift_cfg=shift_cfg)
    y_ref = reference_forward(x, weight, bias, **cfg)

    # f32 path, auto-chosen HW tile.
    y = jax.block_until_ready(tempo_modal_shift_forward(x, weight, bias, **cfg))
    assert y.shape == (NT, Co, H, W)
    assert jnp.allclose(y, y_ref, atol=5e-3, rtol=5e-3), "f32 mismatch vs reference"

    # f32 path with forced 128-wide HW tiles: exercises the (nb, HW//tile)
    # parallel grid (DMA/compute pipelining path).
    y_tiled = jax.block_until_ready(
        tempo_modal_shift_forward(x, weight, bias, tile_hw=128, **cfg))
    assert jnp.allclose(y_tiled, y_ref, atol=5e-3, rtol=5e-3), "tiled mismatch"

    # bf16 matmul inputs (v6e/v7x MXU fast path), f32 accumulation.
    y_bf16 = jax.block_until_ready(
        tempo_modal_shift_forward(x, weight, bias, matmul_dtype=jnp.bfloat16, **cfg))
    assert jnp.allclose(y_bf16, y_ref, atol=5e-2, rtol=5e-2), "bf16 mismatch"

    print("KERNEL_OK")
</pallas_src>

<mosaic_0001>
module attributes {stable_mosaic.version = 11 : i64} {
  func.func @_shift_conv_kernel(%arg0: i32, %arg1: i32, %arg2: memref<1x8x32x256xf32, #tpu.memory_space<vmem>>, %arg3: memref<32x32xf32, #tpu.memory_space<vmem>>, %arg4: memref<32x1xf32, #tpu.memory_space<vmem>>, %arg5: memref<1x8x32x256xf32, #tpu.memory_space<vmem>>) attributes {dimension_semantics = [#tpu.dimension_semantics<parallel>, #tpu.dimension_semantics<parallel>], iteration_bounds = array<i64: 2, 1>, scalar_prefetch = 0 : i64, scratch_operands = 0 : i64, tpu.core_type = #tpu.core_type<tc>, window_params = [{transform_indices = @transform_0, window_bounds = array<i64: 1, 8, 32, 256>}, {pipeline_mode = #tpu.pipeline_mode<synchronous>, transform_indices = @transform_1, window_bounds = array<i64: 32, 32>}, {pipeline_mode = #tpu.pipeline_mode<synchronous>, transform_indices = @transform_2, window_bounds = array<i64: 32, 1>}, {transform_indices = @transform_3, window_bounds = array<i64: 1, 8, 32, 256>}]} {
    %c0 = arith.constant 0 : index
    %c8 = arith.constant 8 : index
    %0 = vector.load %arg3[%c0, %c8] : memref<32x32xf32, #tpu.memory_space<vmem>>, vector<32x24xf32>
    %c0_0 = arith.constant 0 : index
    %c0_1 = arith.constant 0 : index
    %c8_2 = arith.constant 8 : index
    %c0_3 = arith.constant 0 : index
    %1 = vector.load %arg2[%c0_0, %c0_1, %c8_2, %c0_3] : memref<1x8x32x256xf32, #tpu.memory_space<vmem>>, vector<1x8x24x256xf32>
    %2 = vector.shape_cast %1 : vector<1x8x24x256xf32> to vector<8x24x256xf32>
    %3 = vector.shape_cast %0 : vector<32x24xf32> to vector<1x32x24xf32>
    %4 = vector.shape_cast %3 : vector<1x32x24xf32> to vector<1x32x24xf32>
    %5 = vector.broadcast %4 : vector<1x32x24xf32> to vector<8x32x24xf32>
    %cst = arith.constant dense<0.000000e+00> : vector<8x32x256xf32>
    %6 = tpu.matmul %5, %2, %cst {dimension_numbers = #tpu.dot_dimension_numbers<[2], [1], [1], [2], [0, 0, 0, 1, 1, 2], [0], [0]>} : vector<8x32x24xf32>, vector<8x24x256xf32>, vector<8x32x256xf32> -> vector<8x32x256xf32>
    %c0_4 = arith.constant 0 : index
    %c0_5 = arith.constant 0 : index
    %c0_6 = arith.constant 0 : index
    %c0_7 = arith.constant 0 : index
    %7 = vector.load %arg2[%c0_4, %c0_5, %c0_6, %c0_7] : memref<1x8x32x256xf32, #tpu.memory_space<vmem>>, vector<1x8x2x256xf32>
    %8 = vector.shape_cast %7 : vector<1x8x2x256xf32> to vector<8x2x256xf32>
    %c0_8 = arith.constant 0 : index
    %c0_9 = arith.constant 0 : index
    %c2 = arith.constant 2 : index
    %c0_10 = arith.constant 0 : index
    %9 = vector.load %arg2[%c0_8, %c0_9, %c2, %c0_10] : memref<1x8x32x256xf32, #tpu.memory_space<vmem>>, vector<1x8x2x256xf32>
    %10 = vector.shape_cast %9 : vector<1x8x2x256xf32> to vector<8x2x256xf32>
    %11 = vector.extract_strided_slice %8 {offsets = [1, 0, 0], sizes = [7, 2, 256], strides = [1, 1, 1]} : vector<8x2x256xf32> to vector<7x2x256xf32>
    %12 = vector.extract_strided_slice %8 {offsets = [7, 0, 0], sizes = [1, 2, 256], strides = [1, 1, 1]} : vector<8x2x256xf32> to vector<1x2x256xf32>
    %13 = tpu.concatenate %11, %12 in 0 : vector<7x2x256xf32>, vector<1x2x256xf32> -> vector<8x2x256xf32>
    %14 = vector.extract_strided_slice %10 {offsets = [0, 0, 0], sizes = [1, 2, 256], strides = [1, 1, 1]} : vector<8x2x256xf32> to vector<1x2x256xf32>
    %15 = vector.extract_strided_slice %10 {offsets = [0, 0, 0], sizes = [7, 2, 256], strides = [1, 1, 1]} : vector<8x2x256xf32> to vector<7x2x256xf32>
    %16 = tpu.concatenate %14, %15 in 0 : vector<1x2x256xf32>, vector<7x2x256xf32> -> vector<8x2x256xf32>
    %c0_11 = arith.constant 0 : index
    %c0_12 = arith.constant 0 : index
    %17 = vector.load %arg3[%c0_11, %c0_12] : memref<32x32xf32, #tpu.memory_space<vmem>>, vector<32x2xf32>
    %18 = vector.shape_cast %17 : vector<32x2xf32> to vector<1x32x2xf32>
    %19 = vector.shape_cast %18 : vector<1x32x2xf32> to vector<1x32x2xf32>
    %20 = vector.broadcast %19 : vector<1x32x2xf32> to vector<8x32x2xf32>
    %cst_13 = arith.constant dense<0.000000e+00> : vector<8x32x256xf32>
    %21 = tpu.matmul %20, %13, %cst_13 {dimension_numbers = #tpu.dot_dimension_numbers<[2], [1], [1], [2], [0, 0, 0, 1, 1, 2], [0], [0]>} : vector<8x32x2xf32>, vector<8x2x256xf32>, vector<8x32x256xf32> -> vector<8x32x256xf32>
    %c0_14 = arith.constant 0 : index
    %c2_15 = arith.constant 2 : index
    %22 = vector.load %arg3[%c0_14, %c2_15] : memref<32x32xf32, #tpu.memory_space<vmem>>, vector<32x2xf32>
    %23 = vector.shape_cast %22 : vector<32x2xf32> to vector<1x32x2xf32>
    %24 = vector.shape_cast %23 : vector<1x32x2xf32> to vector<1x32x2xf32>
    %25 = vector.broadcast %24 : vector<1x32x2xf32> to vector<8x32x2xf32>
    %cst_16 = arith.constant dense<0.000000e+00> : vector<8x32x256xf32>
    %26 = tpu.matmul %25, %16, %cst_16 {dimension_numbers = #tpu.dot_dimension_numbers<[2], [1], [1], [2], [0, 0, 0, 1, 1, 2], [0], [0]>} : vector<8x32x2xf32>, vector<8x2x256xf32>, vector<8x32x256xf32> -> vector<8x32x256xf32>
    %c0_17 = arith.constant 0 : index
    %c0_18 = arith.constant 0 : index
    %c4 = arith.constant 4 : index
    %c0_19 = arith.constant 0 : index
    %27 = vector.load %arg2[%c0_17, %c0_18, %c4, %c0_19] : memref<1x8x32x256xf32, #tpu.memory_space<vmem>>, vector<1x8x2x256xf32>
    %28 = vector.shape_cast %27 : vector<1x8x2x256xf32> to vector<8x2x256xf32>
    %c0_20 = arith.constant 0 : index
    %c0_21 = arith.constant 0 : index
    %c6 = arith.constant 6 : index
    %c0_22 = arith.constant 0 : index
    %29 = vector.load %arg2[%c0_20, %c0_21, %c6, %c0_22] : memref<1x8x32x256xf32, #tpu.memory_space<vmem>>, vector<1x8x2x256xf32>
    %30 = vector.shape_cast %29 : vector<1x8x2x256xf32> to vector<8x2x256xf32>
    %31 = vector.extract_strided_slice %28 {offsets = [2, 0, 0], sizes = [6, 2, 256], strides = [1, 1, 1]} : vector<8x2x256xf32> to vector<6x2x256xf32>
    %32 = vector.extract_strided_slice %28 {offsets = [6, 0, 0], sizes = [2, 2, 256], strides = [1, 1, 1]} : vector<8x2x256xf32> to vector<2x2x256xf32>
    %33 = tpu.concatenate %31, %32 in 0 : vector<6x2x256xf32>, vector<2x2x256xf32> -> vector<8x2x256xf32>
    %34 = vector.extract_strided_slice %30 {offsets = [0, 0, 0], sizes = [2, 2, 256], strides = [1, 1, 1]} : vector<8x2x256xf32> to vector<2x2x256xf32>
    %35 = vector.extract_strided_slice %30 {offsets = [0, 0, 0], sizes = [6, 2, 256], strides = [1, 1, 1]} : vector<8x2x256xf32> to vector<6x2x256xf32>
    %36 = tpu.concatenate %34, %35 in 0 : vector<2x2x256xf32>, vector<6x2x256xf32> -> vector<8x2x256xf32>
    %c0_23 = arith.constant 0 : index
    %c4_24 = arith.constant 4 : index
    %37 = vector.load %arg3[%c0_23, %c4_24] : memref<32x32xf32, #tpu.memory_space<vmem>>, vector<32x2xf32>
    %38 = vector.shape_cast %37 : vector<32x2xf32> to vector<1x32x2xf32>
    %39 = vector.shape_cast %38 : vector<1x32x2xf32> to vector<1x32x2xf32>
    %40 = vector.broadcast %39 : vector<1x32x2xf32> to vector<8x32x2xf32>
    %cst_25 = arith.constant dense<0.000000e+00> : vector<8x32x256xf32>
    %41 = tpu.matmul %40, %33, %cst_25 {dimension_numbers = #tpu.dot_dimension_numbers<[2], [1], [1], [2], [0, 0, 0, 1, 1, 2], [0], [0]>} : vector<8x32x2xf32>, vector<8x2x256xf32>, vector<8x32x256xf32> -> vector<8x32x256xf32>
    %c0_26 = arith.constant 0 : index
    %c6_27 = arith.constant 6 : index
    %42 = vector.load %arg3[%c0_26, %c6_27] : memref<32x32xf32, #tpu.memory_space<vmem>>, vector<32x2xf32>
    %43 = vector.shape_cast %42 : vector<32x2xf32> to vector<1x32x2xf32>
    %44 = vector.shape_cast %43 : vector<1x32x2xf32> to vector<1x32x2xf32>
    %45 = vector.broadcast %44 : vector<1x32x2xf32> to vector<8x32x2xf32>
    %cst_28 = arith.constant dense<0.000000e+00> : vector<8x32x256xf32>
    %46 = tpu.matmul %45, %36, %cst_28 {dimension_numbers = #tpu.dot_dimension_numbers<[2], [1], [1], [2], [0, 0, 0, 1, 1, 2], [0], [0]>} : vector<8x32x2xf32>, vector<8x2x256xf32>, vector<8x32x256xf32> -> vector<8x32x256xf32>
    %47 = arith.addf %6, %21 : vector<8x32x256xf32>
    %48 = arith.addf %47, %26 : vector<8x32x256xf32>
    %49 = arith.addf %48, %41 : vector<8x32x256xf32>
    %50 = arith.addf %49, %46 : vector<8x32x256xf32>
    %c0_29 = arith.constant 0 : index
    %c0_30 = arith.constant 0 : index
    %51 = vector.load %arg4[%c0_29, %c0_30] : memref<32x1xf32, #tpu.memory_space<vmem>>, vector<32x1xf32>
    %52 = vector.shape_cast %51 : vector<32x1xf32> to vector<1x32x1xf32>
    %53 = vector.broadcast %52 : vector<1x32x1xf32> to vector<8x32x256xf32>
    %54 = arith.addf %50, %53 : vector<8x32x256xf32>
    %c0_31 = arith.constant 0 : index
    %c0_32 = arith.constant 0 : index
    %c0_33 = arith.constant 0 : index
    %c0_34 = arith.constant 0 : index
    %55 = vector.load %arg5[%c0_31, %c0_32, %c0_33, %c0_34] : memref<1x8x32x256xf32, #tpu.memory_space<vmem>>, vector<1x8x32x256xf32>
    %56 = vector.shape_cast %55 : vector<1x8x32x256xf32> to vector<8x32x256xf32>
    %57 = vector.shape_cast %54 : vector<8x32x256xf32> to vector<1x8x32x256xf32>
    tpu.vector_store %arg5[%c0_31, %c0_32, %c0_33, %c0_34], %57 {strides = array<i32>} : memref<1x8x32x256xf32, #tpu.memory_space<vmem>>, vector<1x8x32x256xf32>,
    return
  }
  func.func @transform_0(%arg0: i32, %arg1: i32) -> (i32, i32, i32, i32) {
    %c0_i32 = arith.constant 0 : i32
    %c0_i32_0 = arith.constant 0 : i32
    %c0_i32_1 = arith.constant 0 : i32
    return %arg0, %c0_i32, %c0_i32_0, %arg1 : i32, i32, i32, i32
  }
  func.func @transform_1(%arg0: i32, %arg1: i32) -> (i32, i32) {
    %c0_i32 = arith.constant 0 : i32
    %c0_i32_0 = arith.constant 0 : i32
    %c0_i32_1 = arith.constant 0 : i32
    return %c0_i32, %c0_i32_0 : i32, i32
  }
  func.func @transform_2(%arg0: i32, %arg1: i32) -> (i32, i32) {
    %c0_i32 = arith.constant 0 : i32
    %c0_i32_0 = arith.constant 0 : i32
    %c0_i32_1 = arith.constant 0 : i32
    return %c0_i32, %c0_i32_0 : i32, i32
  }
  func.func @transform_3(%arg0: i32, %arg1: i32) -> (i32, i32, i32, i32) {
    %c0_i32 = arith.constant 0 : i32
    %c0_i32_0 = arith.constant 0 : i32
    %c0_i32_1 = arith.constant 0 : i32
    return %arg0, %c0_i32, %c0_i32_0, %arg1 : i32, i32, i32, i32
  }
}

</mosaic_0001>

<bundles_post_ra>
// kernel: tpu_custom_call.1
= control target key start
LH: loop header
LB: loop body
LE: loop exit
PB: predicated region body
PF: predicated region fallthrough
CT: control target
= control target key end

     0   :  { %8 = vsyncpa [#allocation3], 0  ;;  %s6092_s0 = inlined_call_operand.hbm [shape: f32[2,8,32,256], index: 0, kind: input, shape index: {}]   ;;  %s6093_s1 = inlined_call_operand.vmem [shape: f32[32,32], index: 1, kind: input, shape index: {}]   ;;  %s6094_s2 = inlined_call_operand.vmem [shape: f32[32,1], index: 2, kind: input, shape index: {}]   ;;  %s6095_s3 = inlined_call_operand.hbm [shape: f32[2,8,32,256], index: 3, kind: output, shape index: {}]  }
   0x1   :  { %10 = vsyncpa [#allocation3 + $0x1], 0 }
   0x2   :  { %11 = vsyncpa [#allocation4], 0 }
   0x3   :  { %13 = vsyncpa [#allocation4 + $0x1], 0  ;;  %s4480_s12 = smov 0   ;;  %s4482_s13 = smov 0  }
   0x4   :  { %s4484_s14 = smov 0   ;;  %s4486_s15 = smov 0  }
   0x5   :  { %s4488_s16 = smov 0   ;;  %s4490_s17 = smov 0  }
   0x6 LB: > { %s4059_s18 = sadd.s32 4294967295, %s4446_s17   ;;  %s4060_s19 = sadd.s32 4294967294, %s4446_s17   ;;  %s4446_s17 = sphi %s4490_s17, %s19_s17   ;;  %s4442_s16 = sphi %s4488_s16, %s6440_s16   ;;  %s4438_s15 = sphi %s4486_s15, %s6439_s15   ;;  %s4434_s14 = sphi %s4484_s14, %s6438_s14   ;;  %s4430_s13 = sphi %s4482_s13, %s6437_s13   ;;  %s4426_s12 = sphi %s4480_s12, %s6436_s12  }
   0x7   : > { %s31_s20 = sadd.s32 1, %s4442_s16  ;;  %s40_s21 = sadd.s32 1, %s4434_s14 }
   0x8   : > { %p33_p0 = scmp.ge.s32.totalorder %s31_s20, 2  ;;  %p47_p1 = scmp.ne.s32.totalorder %s4434_s14, %s4430_s13 }
   0x9   : > { %p48_p2 = scmp.eq.s32.totalorder %s4446_s17, 0  ;;  %p53_p3 = scmp.ne.s32.totalorder %s4430_s13, %s4426_s12 }
   0xa   : > { %s6442_s20 = smov (%p33_p0, %s31_s20), 0  ;;  %p54_p5 = scmp.eq.s32.totalorder %s4059_s18, 0 }
   0xb   : > { %p4521_p4 = por %p48_p2, %p47_p1  ;;  %s35_s23 = ssub.s32 %s4442_s16, %s6442_s20 }
   0xc   : > { %p121_p6 = scmp.eq.s32.totalorder %s4059_s18, 1  ;;  %p38_p7 = scmp.eq.s32.totalorder %s35_s23, 0 }
   0xd   : > { %p4527_p8 = por %p54_p5, %p53_p3  ;;  %p127_p10 = scmp.eq.s32.totalorder %s4060_s19, 1 }
   0xe   : > { %p4531_p9 = por %p121_p6, %p47_p1  ;;  %p4276_p13 = scmp.lt.s32.totalorder %s4446_s17, 2 }
   0xf   : > { %s4536_s26 = scalar_select %p38_p7, %s4434_s14, %s40_s21  }
  0x10   : > { %p4538_p11 = por %p127_p10, %p53_p3  ;;  %s153_s28 = sand.u32 1, %s4434_s14  }
  0x11   : > { %s4063_s29 = sshll.u32 %s153_s28, 9  ;;  %s4262_s30 = sshll.u32 %s4442_s16, 13 }
  0x12   : > { %s165_s6 = scalar_lea.hbm %s6092_s0, %s4262_s30  ;;  %s157_s7 = scalar_lea.vmem [#allocation2], %s4063_s29 }
  0x13   : > { %s166_s8 = sshll.u32 %s157_s7, 4  ;;  %p4551_p0 = pnand %p4276_p13, %p4521_p4  ;;  %s167_s8 = int_to_ptr.vmem [resolvable:$true] %s166_s8 }
  0x14   : > { %p4066_p1 = scmp.ge.s32.totalorder %s4446_s17, 1  ;;  %s154_s10 = scalar_lea.sflag [#allocation3], %s153_s28 }
  0x15   : > { %p4340_p2 = pneg %p4551_p0  ;;  %s4351_s11 = scalar_lea.vmem %s167_s8, 8192 }
  0x16   : > { %p4352_p3 = scmp.ne.s32.totalorder %s167_s8, %s4351_s11  ;;  %s4448_s18 = smov [#allocation2]  }
  0x17   : > { %s4356_s19 = sshll.u32 %s4448_s18, 4  ;;  %s4357_s19 = int_to_ptr.vmem [resolvable:$false] %s4356_s19 }
  0x18   : > { %p4354_p5 = pnand %p4352_p3, %p4340_p2  ;;  %s4358_s21 = scalar_lea.vmem %s4357_s19, 16384 }
  0x19   : > { %p4359_p7 = scmp.lt.s32.totalorder %s167_s8, %s4357_s19  ;;  %p4360_p10 = scmp.lt.s32.totalorder %s4358_s21, %s4351_s11 }
  0x1a   : > { %p4355_p6 = pneg %p4354_p5 }
  0x1b   : > { %p4361_p12 = por %p4360_p10, %p4359_p7 }
  0x1d   : > { %p4362_p4 = pnand %p4361_p12, %p4355_p6 }
  0x1f   : > { %4365 = shalt.err (!%p4362_p4)
}
  0x20   : > { %s4449_s22 = smov 256   ;;  %s4450_s23 = smov 16  }
  0x21   : > { %4271 = dma.hbm_to_vmem [thread:$0]  (!%p4551_p0), %s165_s6, 8192, %s167_s8, %s154_s10, %s4449_s22, %s4449_s22, %s4450_s23  }
  0x22   : > { %p174_p13 = scmp.lt.s32.totalorder %s4446_s17, 3 }
  0x24   : > { %p175_p2 = pnand %p4066_p1, %p174_p13 }
  0x26   : > { %178 = sbr.rel (%p175_p2) target bundleno = 609 (0x261), region = 32 }
  0x2b   : > { %s4564_s28 = sand.u32 1, %s4430_s13  }
  0x2c   : > { %s4067_s29 = sshll.u32 %s4564_s28, 9  ;;  %s181_s30 = scalar_lea.sflag [#allocation3], %s4564_s28 }
  0x2d   : > { %s4570_s4 = scalar_lea.vmem [#allocation2], %s4067_s29 }
  0x2e   : > { %4417 = dma.done.wait (%p4527_p8), %s181_s30, 8192  }
  0x2f   : > { %4419 = vsyncadd (%p4527_p8), %s181_s30, 4294959104  ;;  %v4451_v0 = vmov 0.0   ;;  %vm302_vm0 = vcmask 1041408   ;;  %v4581_v1 = vld [vmem:[%s6093_s1] sm:$0xff]  ;;  %v4586_v2 = vld [vmem:[%s6093_s1 + $0x8] sm:$0xff]  ;;  %s4452_s10 = smov 126  }
  0x30   : > { %373 = vmatprep.mubr.f32.mxu0 %v4451_v0  ;;  %468 = vmatprep.mubr.f32.mxu1 %v4451_v0  ;;  %v4591_v3 = vld [vmem:[%s6093_s1 + $0x10] sm:$0xff]  ;;  %v4598_v4 = vld [vmem:[%s6093_s1 + $0x18] sm:$0xff]  ;;  %v262_v5 = vld [vmem:[%s4570_s4 + $0x48] sm:$0x3]  ;;  %vm289_vm1 = vcmask 15360   ;;  %s4453_s19 = smov 124  }
  0x31   : > { %968 = vrot.lane.b32.xlu0 %v4581_v1, %s4452_s10  ;;  %972 = vrot.lane.b32.xlu1 %v4591_v3, %s4452_s10  ;;  %v261_v6 = vld [vmem:[%s4570_s4 + $0x40] sm:$0x3]  ;;  %v264_v7 = vld [vmem:[%s4570_s4 + $0x88] sm:$0x3]  ;;  %s4454_s21 = smov 122   ;;  %s4455_s22 = smov 120  }
  0x32   : > { %4069 = vmatprep.subr.msk.mxu0 %vm302_vm0, %v262_v5  ;;  %v263_v8 = vld [vmem:[%s4570_s4 + $0x80] sm:$0x3]  ;;  %4075 = vmatprep.subr.msk.mxu1 %vm302_vm0, %v264_v7  ;;  %v266_v9 = vld [vmem:[%s4570_s4 + $0xc8] sm:$0x3]  ;;  %v276_v16 = vld [vmem:[%s4570_s4 + $0x8] sm:$0xc] }
  0x33   : > { %4070 = vmatpush1.msk.msra.mxu0 %vm302_vm0, %v261_v6  ;;  %4076 = vmatpush1.msk.msra.mxu1 %vm302_vm0, %v263_v8  ;;  %v268_v10 = vld [vmem:[%s4570_s4 + $0x108] sm:$0x3]  ;;  %v267_v11 = vld [vmem:[%s4570_s4 + $0x100] sm:$0x3]  ;;  %v979_v19 = vrot.slane %v276_v16, 2  ;;  %vm2891_vm2 = vcmask 195584  }
  0x34   : > { %4071 = vmatmul.mubr.msk.f32.vlgmr.msra.gmra.mxu0 %vm289_vm1, %v4581_v1  ;;  %4077 = vmatmul.mubr.msk.f32.vlgmr.msra.gmra.mxu1 %vm289_vm1, %v4581_v1  ;;  %v265_v12 = vld [vmem:[%s4570_s4 + $0xc0] sm:$0x3]  ;;  %v270_v13 = vld [vmem:[%s4570_s4 + $0x148] sm:$0x3]  ;;  %v278_v20 = vld [vmem:[%s4570_s4 + $0x48] sm:$0xc] }
  0x35   : > { %970 = vrot.lane.b32.xlu0 %v4586_v2, %s4452_s10  ;;  %974 = vrot.lane.b32.xlu1 %v4598_v4, %s4452_s10  ;;  %v272_v14 = vld [vmem:[%s4570_s4 + $0x188] sm:$0x3]  ;;  %v269_v15 = vld [vmem:[%s4570_s4 + $0x140] sm:$0x3]  ;;  %v1084_v23 = vrot.slane %v278_v20, 2 }
  0x36   : > { %379 = vmatprep.mubr.f32.mxu0 %v4451_v0  ;;  %4081 = vmatprep.subr.msk.mxu0 %vm302_vm0, %v266_v9  ;;  %v274_v17 = vld [vmem:[%s4570_s4 + $0x1c8] sm:$0x3]  ;;  %v271_v18 = vld [vmem:[%s4570_s4 + $0x180] sm:$0x3]  ;;  %v275_v21 = vld [vmem:[%s4570_s4] sm:$0xc] }
  0x37   : > { %4087 = vmatprep.subr.msk.mxu1 %vm302_vm0, %v268_v10  ;;  %4082 = vmatpush1.msk.msra.mxu0 %vm302_vm0, %v265_v12  ;;  %v273_v22 = vld [vmem:[%s4570_s4 + $0x1c0] sm:$0x3]  ;;  %v280_v24 = vld [vmem:[%s4570_s4 + $0x88] sm:$0xc]  ;;  %v978_v25 = vrot.slane %v275_v21, 2 }
  0x38   : > { %4072 = vmatmul.mubr.msk.f32.gmra.mxu0 %vm289_vm1, %v4586_v2  ;;  %4088 = vmatpush1.msk.msra.mxu1 %vm302_vm0, %v267_v11  ;;  %v1181_v26 = vrot.slane %v280_v24, 2  ;;  %v277_v27 = vld [vmem:[%s4570_s4 + $0x40] sm:$0xc]  ;;  %v282_v28 = vld [vmem:[%s4570_s4 + $0xc8] sm:$0xc] }
  0x39   : > { %1687 = vrot.lane.b32.xlu0 %v4581_v1, %s4453_s19  ;;  %1689 = vrot.lane.b32.xlu1 %v4586_v2, %s4453_s19  ;;  %v1083_v29 = vrot.slane %v277_v27, 2  ;;  %v1278_v30 = vrot.slane %v282_v28, 2  ;;  %v279_v31 = vld [vmem:[%s4570_s4 + $0x80] sm:$0xc]  ;;  %v284_v33 = vld [vmem:[%s4570_s4 + $0x108] sm:$0xc] }
  0x3a   : > { %385 = vmatprep.mubr.f32.mxu0 %v4451_v0  ;;  %474 = vmatprep.mubr.f32.mxu1 %v4451_v0  ;;  %v281_v32 = vld [vmem:[%s4570_s4 + $0xc0] sm:$0xc]  ;;  %v286_v34 = vld [vmem:[%s4570_s4 + $0x148] sm:$0xc]  ;;  %v1180_v35 = vrot.slane %v279_v31, 2  ;;  %v1375_v38 = vrot.slane %v284_v33, 2 }
  0x3b   : > { %4093 = vmatprep.subr.msk.mxu0 %vm302_vm0, %v270_v13  ;;  %4078 = vmatmul.mubr.msk.f32.gmra.mxu1 %vm289_vm1, %v4586_v2  ;;  %v1277_v36 = vrot.slane %v281_v32, 2  ;;  %v1472_v39 = vrot.slane %v286_v34, 2  ;;  %v283_v43 = vld [vmem:[%s4570_s4 + $0x100] sm:$0xc]  ;;  %v288_v45 = vld [vmem:[%s4570_s4 + $0x188] sm:$0xc] }
  0x3c   : > { %4073 = vmatmul.mubr.msk.f32.gmra.mxu0 %vm289_vm1, %v4591_v3  ;;  %480 = vmatprep.mubr.f32.mxu1 %v4451_v0  ;;  %v285_v44 = vld [vmem:[%s4570_s4 + $0x140] sm:$0xc]  ;;  %v1664_v46 = vld [vmem:[%s4570_s4 + $0x88] sm:$0x30]  ;;  %v1374_v47 = vrot.slane %v283_v43, 2  ;;  %v1569_v49 = vrot.slane %v288_v45, 2 }
  0x3d   : > { %1691 = vrot.lane.b32.xlu0 %v4591_v3, %s4453_s19  ;;  %1693 = vrot.lane.b32.xlu1 %v4598_v4, %s4453_s19  ;;  %v1471_v48 = vrot.slane %v285_v44, 2  ;;  %v1698_v50 = vrot.slane %v1664_v46, 4  ;;  %v287_v51 = vld [vmem:[%s4570_s4 + $0x180] sm:$0xc]  ;;  %v1663_v52 = vld [vmem:[%s4570_s4 + $0x80] sm:$0x30] }
  0x3e   : > { %391 = vmatprep.mubr.f32.mxu0 %v4451_v0  ;;  %4099 = vmatprep.subr.msk.mxu1 %vm302_vm0, %v272_v14  ;;  %v1666_v53 = vld [vmem:[%s4570_s4 + $0xc8] sm:$0x30]  ;;  %v1568_v55 = vrot.slane %v287_v51, 2  ;;  %v1697_v56 = vrot.slane %v1663_v52, 4  ;;  %v1665_v59 = vld [vmem:[%s4570_s4 + $0xc0] sm:$0x30] }
  0x3f   : > { %4079 = vmatmul.mubr.msk.f32.gmra.mxu1 %vm289_vm1, %v4591_v3  ;;  %v1668_v54 = vld [vmem:[%s4570_s4 + $0x108] sm:$0x30]  ;;  %v1803_v57 = vrot.slane %v1666_v53, 4  ;;  %v1667_v60 = vld [vmem:[%s4570_s4 + $0x100] sm:$0x30]  ;;  %v4456_v32 = vmov 0  }
  0x40   : > { %4074 = vmatmul.mubr.msk.f32.gmra.mxu0 %vm289_vm1, %v4598_v4  ;;  %486 = vmatprep.mubr.f32.mxu1 %v4451_v0  ;;  %v1900_v58 = vrot.slane %v1668_v54, 4  ;;  %v1670_v61 = vld [vmem:[%s4570_s4 + $0x148] sm:$0x30]  ;;  %v1669_v8 = vld [vmem:[%s4570_s4 + $0x140] sm:$0x30]  ;;  %v3807_v52 = vld [vmem:[%s6094_s2 + $0x18] sm:$0xff] }
  0x41   : > { %563 = vmatprep.mubr.f32.mxu0 %v4451_v0  ;;  %2285 = vrot.lane.b32.xlu0 %v4581_v1, %s4454_s21  ;;  %v1672_v62 = vld [vmem:[%s4570_s4 + $0x188] sm:$0x30]  ;;  %v1671_v9 = vld [vmem:[%s4570_s4 + $0x180] sm:$0x30]  ;;  %v1676_v11 = vld [vmem:[%s4570_s4 + $0x8] sm:$0xc0] }
  0x42   : > { %2287 = vrot.lane.b32.xlu1 %v4586_v2, %s4454_s21  ;;  %v1674_v10 = vld [vmem:[%s4570_s4 + $0x1c8] sm:$0x30]  ;;  %v1996_v12 = vrot.slane %v1669_v8, 4  ;;  %v2093_v13 = vrot.slane %v1671_v9, 4  ;;  %v1673_v16 = vld [vmem:[%s4570_s4 + $0x1c0] sm:$0x30]  ;;  %4336 = vset.pattern.permute.xlu0 %v4456_v32 }
  0x43   : > { %4080 = vmatmul.mubr.msk.f32.gmra.mxu1 %vm289_vm1, %v4598_v4  ;;  %v2191_v14 = vrot.slane %v1674_v10, 4  ;;  %v2190_v20 = vrot.slane %v1673_v16, 4  ;;  %v1679_v31 = vld [vmem:[%s4570_s4 + $0x80] sm:$0xc0]  ;;  %4337 = vset.pattern.permute.xlu1 %v4456_v32  ;;  %v1682_v33 = vld [vmem:[%s4570_s4 + $0xc8] sm:$0xc0] }
  0x44   : > { %4083 = vmatmul.mubr.msk.f32.vlgmr.msra.gmra.mxu0 %vm289_vm1, %v4581_v1  ;;  %658 = vmatprep.mubr.f32.mxu1 %v4451_v0  ;;  %v1684_v34 = vld [vmem:[%s4570_s4 + $0x108] sm:$0xc0]  ;;  %v1681_v54 = vld [vmem:[%s4570_s4 + $0xc0] sm:$0xc0]  ;;  %v223_v32 = vld [vmem:[%s4570_s4 + $0x70] sm:$0xff] }
  0x45   : > { %569 = vmatprep.mubr.f32.mxu0 %v4451_v0  ;;  %4094 = vmatpush1.msk.msra.mxu0 %vm302_vm0, %v269_v15  ;;  %v2296_v15 = vrot.slane %v1676_v11, 6  ;;  %v3805_v46 = vld [vmem:[%s6094_s2 + $0x8] sm:$0xff]  ;;  %v217_v11 = vld [vmem:[%s4570_s4 + $0x30] sm:$0xff]  ;;  %v215_v16 = vld [vmem:[%s4570_s4 + $0x20] sm:$0xff] }
  0x46   : > { %2289 = vrot.lane.b32.xlu0 %v4591_v3, %s4454_s21  ;;  %4105 = vmatprep.subr.msk.mxu0 %vm302_vm0, %v274_v17  ;;  %v1675_v17 = vld [vmem:[%s4570_s4] sm:$0xc0] }
  0x47   : > { %2291 = vrot.lane.b32.xlu1 %v4598_v4, %s4454_s21  ;;  %4089 = vmatmul.mubr.msk.f32.vlgmr.msra.gmra.mxu1 %vm289_vm1, %v4581_v1  ;;  %v2295_v21 = vrot.slane %v1675_v17, 6  ;;  %v214_v17 = vld [vmem:[%s4570_s4 + $0x18] sm:$0xff] }
  0x48   : > { %4084 = vmatmul.mubr.msk.f32.gmra.mxu0 %vm289_vm1, %v4586_v2  ;;  %4100 = vmatpush1.msk.msra.mxu1 %vm302_vm0, %v271_v18  ;;  %v1678_v18 = vld [vmem:[%s4570_s4 + $0x48] sm:$0xc0] }
  0x49   : > { %575 = vmatprep.mubr.f32.mxu0 %v4451_v0  ;;  %664 = vmatprep.mubr.f32.mxu1 %v4451_v0 }
  0x4a   : > { %4111 = vmatprep.subr.msk.mxu1 %vm302_vm0, %v979_v19  ;;  %2883 = vrot.lane.b32.xlu0 %v4581_v1, %s4455_s22  ;;  %v1680_v19 = vld [vmem:[%s4570_s4 + $0x88] sm:$0xc0] }
  0x4b   : > { %2885 = vrot.lane.b32.xlu1 %v4586_v2, %s4455_s22  ;;  %4090 = vmatmul.mubr.msk.f32.gmra.mxu1 %vm289_vm1, %v4586_v2 }
  0x4c   : > { %4085 = vmatmul.mubr.msk.f32.gmra.mxu0 %vm289_vm1, %v4591_v3  ;;  %670 = vmatprep.mubr.f32.mxu1 %v4451_v0 }
  0x4d   : > { %581 = vmatprep.mubr.f32.mxu0 %v4451_v0 }
  0x4e   : > { %2887 = vrot.lane.b32.xlu0 %v4591_v3, %s4455_s22 }
  0x4f   : > { %2889 = vrot.lane.b32.xlu1 %v4598_v4, %s4455_s22  ;;  %4091 = vmatmul.mubr.msk.f32.gmra.mxu1 %vm289_vm1, %v4591_v3  ;;  %s4457_s22 = smov [#allocation5]  }
  0x50   : > { %4086 = vmatmul.mubr.msk.f32.gmra.mxu0 %vm289_vm1, %v4598_v4  ;;  %676 = vmatprep.mubr.f32.mxu1 %v4451_v0  ;;  %s4370_s23 = sshll.u32 %s4457_s22, 4  ;;  %s4371_s23 = int_to_ptr.vmem [resolvable:$false] %s4370_s23 }
  0x51   : > { %753 = vmatprep.mubr.f32.mxu0 %v4451_v0  ;;  %s4372_s30 = scalar_lea.vmem %s4371_s23, 16384 }
  0x53   : > { %4092 = vmatmul.mubr.msk.f32.gmra.mxu1 %vm289_vm1, %v4598_v4  ;;  %3815 = vperm.xlu1 %4337, %v3805_v46   ;;  %v228_v46 = vld [vmem:[%s4570_s4 + $0xa8] sm:$0xff] }
  0x54   : > { %4095 = vmatmul.mubr.msk.f32.vlgmr.msra.gmra.mxu0 %vm289_vm1, %v4581_v1  ;;  %848 = vmatprep.mubr.f32.mxu1 %v4451_v0 }
  0x55   : > { %759 = vmatprep.mubr.f32.mxu0 %v4451_v0  ;;  %4106 = vmatpush1.msk.msra.mxu0 %vm302_vm0, %v273_v22  ;;  %v2401_v22 = vrot.slane %v1678_v18, 6 }
  0x56   : > { %4117 = vmatprep.subr.msk.mxu0 %vm302_vm0, %v1084_v23  ;;  %v2498_v23 = vrot.slane %v1680_v19, 6 }
  0x57   : > { %4101 = vmatmul.mubr.msk.f32.vlgmr.msra.gmra.mxu1 %vm289_vm1, %v4581_v1 }
  0x58   : > { %4096 = vmatmul.mubr.msk.f32.gmra.mxu0 %vm289_vm1, %v4586_v2  ;;  %4112 = vmatpush1.msk.msra.mxu1 %vm302_vm0, %v978_v25 }
  0x59   : > { %765 = vmatprep.mubr.f32.mxu0 %v4451_v0  ;;  %854 = vmatprep.mubr.f32.mxu1 %v4451_v0 }
  0x5a   : > { %4123 = vmatprep.subr.msk.mxu1 %vm302_vm0, %v1181_v26 }
  0x5b   : > { %4102 = vmatmul.mubr.msk.f32.gmra.mxu1 %vm289_vm1, %v4586_v2 }
  0x5c   : > { %4097 = vmatmul.mubr.msk.f32.gmra.mxu0 %vm289_vm1, %v4591_v3  ;;  %860 = vmatprep.mubr.f32.mxu1 %v4451_v0 }
  0x5d   : > { %771 = vmatprep.mubr.f32.mxu0 %v4451_v0 }
  0x5f   : > { %4103 = vmatmul.mubr.msk.f32.gmra.mxu1 %vm289_vm1, %v4591_v3 }
  0x60   : > { %4098 = vmatmul.mubr.msk.f32.gmra.mxu0 %vm289_vm1, %v4598_v4  ;;  %866 = vmatprep.mubr.f32.mxu1 %v4451_v0 }
  0x61   : > { %943 = vmatprep.mubr.f32.mxu0 %v4451_v0 }
  0x63   : > { %4104 = vmatmul.mubr.msk.f32.gmra.mxu1 %vm289_vm1, %v4598_v4 }
  0x64   : > { %4107 = vmatmul.mubr.msk.f32.vlgmr.msra.gmra.mxu0 %vm289_vm1, %v4581_v1  ;;  %1056 = vmatprep.mubr.f32.mxu1 %v4451_v0  ;;  %v1802_v1 = vrot.slane %v1665_v59, 4  ;;  %v2594_v59 = vrot.slane %v1681_v54, 6 }
  0x65   : > { %949 = vmatprep.mubr.f32.mxu0 %v4451_v0  ;;  %4118 = vmatpush1.msk.msra.mxu0 %vm302_vm0, %v1083_v29  ;;  %v1677_v29 = vld [vmem:[%s4570_s4 + $0x40] sm:$0xc0] }
  0x66   : > { %4129 = vmatprep.subr.msk.mxu0 %vm302_vm0, %v1278_v30 }
  0x68   : > { %4108 = vmatmul.mubr.msk.f32.gmra.mxu0 %vm289_vm1, %v4586_v2  ;;  %v1899_v2 = vrot.slane %v1667_v60, 4 }
  0x69   : > { %955 = vmatprep.mubr.f32.mxu0 %v4451_v0 }
  0x6c   : > { %4109 = vmatmul.mubr.msk.f32.gmra.mxu0 %vm289_vm1, %v4591_v3  ;;  %v1997_v3 = vrot.slane %v1670_v61, 4 }
  0x6d   : > { %961 = vmatprep.mubr.f32.mxu0 %v4451_v0 }
  0x70   : > { %4110 = vmatmul.mubr.msk.f32.gmra.mxu0 %vm289_vm1, %v4598_v4  ;;  %v2094_v4 = vrot.slane %v1672_v62, 4 }
  0x71   : > { %1153 = vmatprep.mubr.f32.mxu0 %v4451_v0 }
  0xa3   : > { %v4742_v37 = vpop.permute.xlu0 %968  ;;  %v4754_v41 = vpop.permute.xlu1 %972 }
  0xa4   : > { %4113 = vmatmul.mubr.msk.f32.vlgmr.msra.gmra.mxu1 %vm289_vm1, %v4742_v37  ;;  %4119 = vmatmul.mubr.msk.f32.vlgmr.msra.gmra.mxu0 %vm289_vm1, %v4742_v37 }
  0xa5   : > { %4124 = vmatpush1.msk.msra.mxu1 %vm302_vm0, %v1180_v35  ;;  %1062 = vmatprep.mubr.f32.mxu1 %v4451_v0 }
  0xa6   : > { %1159 = vmatprep.mubr.f32.mxu0 %v4451_v0  ;;  %4130 = vmatpush1.msk.msra.mxu0 %vm302_vm0, %v1277_v36  ;;  %v3804_v36 = vld [vmem:[%s6094_s2] sm:$0xff] }
  0xa7   : > { %v4752_v40 = vpop.permute.xlu0 %970  ;;  %4135 = vmatprep.subr.msk.mxu1 %vm302_vm0, %v1375_v38  ;;  %4141 = vmatprep.subr.msk.mxu0 %vm302_vm0, %v1472_v39  ;;  %v4768_v42 = vpop.permute.xlu1 %974  ;;  %v2400_v38 = vrot.slane %v1677_v29, 6  ;;  %v2497_v39 = vrot.slane %v1679_v31, 6 }
  0xa8   : > { %4114 = vmatmul.mubr.msk.f32.gmra.mxu1 %vm289_vm1, %v4752_v40  ;;  %4120 = vmatmul.mubr.msk.f32.gmra.mxu0 %vm289_vm1, %v4752_v40 }
  0xa9   : > { %1068 = vmatprep.mubr.f32.mxu1 %v4451_v0  ;;  %1165 = vmatprep.mubr.f32.mxu0 %v4451_v0 }
  0xaa   : > { %3810 = vperm.xlu0 %4336, %v3804_v36   ;;  %v221_v36 = vld [vmem:[%s4570_s4 + $0x60] sm:$0xff] }
  0xab   : > { %v4844_v63 = vpop.permute.xlu0 %1687  ;;  %v4853_v5 = vpop.permute.xlu1 %1689 }
  0xac   : > { %4115 = vmatmul.mubr.msk.f32.gmra.mxu1 %vm289_vm1, %v4754_v41  ;;  %4121 = vmatmul.mubr.msk.f32.gmra.mxu0 %vm289_vm1, %v4754_v41 }
  0xad   : > { %1074 = vmatprep.mubr.f32.mxu1 %v4451_v0  ;;  %1171 = vmatprep.mubr.f32.mxu0 %v4451_v0 }
  0xae   : > { %3825 = vperm.xlu0 %4336, %v3807_v52   ;;  %v227_v52 = vld [vmem:[%s4570_s4 + $0xa0] sm:$0xff] }
  0xaf   : > { %v4864_v6 = vpop.permute.xlu0 %1691  ;;  %v4872_v7 = vpop.permute.xlu1 %1693 }
  0xb0   : > { %4116 = vmatmul.mubr.msk.f32.gmra.mxu1 %vm289_vm1, %v4768_v42  ;;  %4122 = vmatmul.mubr.msk.f32.gmra.mxu0 %vm289_vm1, %v4768_v42 }
  0xb1   : > { %1250 = vmatprep.mubr.f32.mxu1 %v4451_v0  ;;  %1347 = vmatprep.mubr.f32.mxu0 %v4451_v0 }
  0xb4   : > { %4125 = vmatmul.mubr.msk.f32.vlgmr.msra.gmra.mxu1 %vm289_vm1, %v4742_v37  ;;  %4131 = vmatmul.mubr.msk.f32.vlgmr.msra.gmra.mxu0 %vm289_vm1, %v4742_v37  ;;  %v4978_v44 = vpop.permute.xlu1 %2287 }
  0xb5   : > { %4136 = vmatpush1.msk.msra.mxu1 %vm302_vm0, %v1374_v47  ;;  %1256 = vmatprep.mubr.f32.mxu1 %v4451_v0 }
  0xb6   : > { %1353 = vmatprep.mubr.f32.mxu0 %v4451_v0  ;;  %4142 = vmatpush1.msk.msra.mxu0 %vm302_vm0, %v1471_v48 }
  0xb7   : > { %4147 = vmatprep.subr.msk.mxu1 %vm302_vm0, %v1569_v49  ;;  %4153 = vmatprep.subr.msk.mxu0 %vm302_vm0, %v1698_v50  ;;  %v3806_v50 = vld [vmem:[%s6094_s2 + $0x10] sm:$0xff] }
  0xb8   : > { %4126 = vmatmul.mubr.msk.f32.gmra.mxu1 %vm289_vm1, %v4752_v40  ;;  %4132 = vmatmul.mubr.msk.f32.gmra.mxu0 %vm289_vm1, %v4752_v40 }
  0xb9   : > { %1262 = vmatprep.mubr.f32.mxu1 %v4451_v0  ;;  %1359 = vmatprep.mubr.f32.mxu0 %v4451_v0  ;;  %v5014_v53 = vpop.permute.xlu1 %2291 }
  0xba   : > { %3820 = vperm.xlu1 %4337, %v3806_v50   ;;  %v219_v50 = vld [vmem:[%s4570_s4 + $0x50] sm:$0xff] }
  0xbc   : > { %4127 = vmatmul.mubr.msk.f32.gmra.mxu1 %vm289_vm1, %v4754_v41  ;;  %4133 = vmatmul.mubr.msk.f32.gmra.mxu0 %vm289_vm1, %v4754_v41 }
  0xbd   : > { %1268 = vmatprep.mubr.f32.mxu1 %v4451_v0  ;;  %1365 = vmatprep.mubr.f32.mxu0 %v4451_v0 }
  0xc0   : > { %4128 = vmatmul.mubr.msk.f32.gmra.mxu1 %vm289_vm1, %v4768_v42  ;;  %4134 = vmatmul.mubr.msk.f32.gmra.mxu0 %vm289_vm1, %v4768_v42 }
  0xc1   : > { %1444 = vmatprep.mubr.f32.mxu1 %v4451_v0  ;;  %1541 = vmatprep.mubr.f32.mxu0 %v4451_v0 }
  0xc4   : > { %4137 = vmatmul.mubr.msk.f32.vlgmr.msra.gmra.mxu1 %vm289_vm1, %v4742_v37  ;;  %4143 = vmatmul.mubr.msk.f32.vlgmr.msra.gmra.mxu0 %vm289_vm1, %v4742_v37 }
  0xc5   : > { %4148 = vmatpush1.msk.msra.mxu1 %vm302_vm0, %v1568_v55  ;;  %1450 = vmatprep.mubr.f32.mxu1 %v4451_v0 }
  0xc6   : > { %1547 = vmatprep.mubr.f32.mxu0 %v4451_v0  ;;  %4154 = vmatpush1.msk.msra.mxu0 %vm302_vm0, %v1697_v56  ;;  %v1683_v56 = vld [vmem:[%s4570_s4 + $0x100] sm:$0xc0] }
  0xc7   : > { %4159 = vmatprep.subr.msk.mxu1 %vm302_vm0, %v1803_v57  ;;  %4165 = vmatprep.subr.msk.mxu0 %vm302_vm0, %v1900_v58  ;;  %v1686_v57 = vld [vmem:[%s4570_s4 + $0x148] sm:$0xc0]  ;;  %v2691_v60 = vrot.slane %v1683_v56, 6 }
  0xc8   : > { %4138 = vmatmul.mubr.msk.f32.gmra.mxu1 %vm289_vm1, %v4752_v40  ;;  %4144 = vmatmul.mubr.msk.f32.gmra.mxu0 %vm289_vm1, %v4752_v40  ;;  %v2789_v62 = vrot.slane %v1686_v57, 6 }
  0xc9   : > { %1456 = vmatprep.mubr.f32.mxu1 %v4451_v0  ;;  %1553 = vmatprep.mubr.f32.mxu0 %v4451_v0 }
  0xcc   : > { %4139 = vmatmul.mubr.msk.f32.gmra.mxu1 %vm289_vm1, %v4754_v41  ;;  %4145 = vmatmul.mubr.msk.f32.gmra.mxu0 %vm289_vm1, %v4754_v41 }
  0xcd   : > { %1462 = vmatprep.mubr.f32.mxu1 %v4451_v0  ;;  %1559 = vmatprep.mubr.f32.mxu0 %v4451_v0 }
  0xd0   : > { %4140 = vmatmul.mubr.msk.f32.gmra.mxu1 %vm289_vm1, %v4768_v42  ;;  %4146 = vmatmul.mubr.msk.f32.gmra.mxu0 %vm289_vm1, %v4768_v42 }
  0xd1   : > { %1638 = vmatprep.mubr.f32.mxu1 %v4451_v0  ;;  %1775 = vmatprep.mubr.f32.mxu0 %v4451_v0 }
  0xd4   : > { %4149 = vmatmul.mubr.msk.f32.vlgmr.msra.gmra.mxu1 %vm289_vm1, %v4742_v37  ;;  %4155 = vmatmul.mubr.msk.f32.vlgmr.msra.gmra.mxu0 %vm289_vm1, %v4844_v63  ;;  %v4965_v37 = vpop.permute.xlu0 %2285 }
  0xd5   : > { %4160 = vmatpush1.msk.msra.mxu1 %vm302_vm0, %v1802_v1  ;;  %1644 = vmatprep.mubr.f32.mxu1 %v4451_v0 }
  0xd6   : > { %1781 = vmatprep.mubr.f32.mxu0 %v4451_v0  ;;  %4166 = vmatpush1.msk.msra.mxu0 %vm302_vm0, %v1899_v2 }
  0xd7   : > { %4171 = vmatprep.subr.msk.mxu1 %vm302_vm0, %v1997_v3  ;;  %4177 = vmatprep.subr.msk.mxu0 %vm302_vm0, %v2094_v4 }
  0xd8   : > { %4150 = vmatmul.mubr.msk.f32.gmra.mxu1 %vm289_vm1, %v4752_v40  ;;  %4156 = vmatmul.mubr.msk.f32.gmra.mxu0 %vm289_vm1, %v4853_v5  ;;  %v4996_v48 = vpop.permute.xlu0 %2289 }
  0xd9   : > { %1650 = vmatprep.mubr.f32.mxu1 %v4451_v0  ;;  %1787 = vmatprep.mubr.f32.mxu0 %v4451_v0 }
  0xdc   : > { %4151 = vmatmul.mubr.msk.f32.gmra.mxu1 %vm289_vm1, %v4754_v41  ;;  %4157 = vmatmul.mubr.msk.f32.gmra.mxu0 %vm289_vm1, %v4864_v6  ;;  %v2595_v41 = vrot.slane %v1682_v33, 6  ;;  %v5122_v31 = vpop.permute.xlu0 %2883 }
  0xdd   : > { %1656 = vmatprep.mubr.f32.mxu1 %v4451_v0  ;;  %1793 = vmatprep.mubr.f32.mxu0 %v4451_v0 }
  0xe0   : > { %4152 = vmatmul.mubr.msk.f32.gmra.mxu1 %vm289_vm1, %v4768_v42  ;;  %4158 = vmatmul.mubr.msk.f32.gmra.mxu0 %vm289_vm1, %v4872_v7  ;;  %v2692_v42 = vrot.slane %v1684_v34, 6  ;;  %v222_v34 = vld [vmem:[%s4570_s4 + $0x68] sm:$0xff]  ;;  %v5154_v56 = vpop.permute.xlu0 %2887 }
  0xe1   : > { %1872 = vmatprep.mubr.f32.mxu1 %v4451_v0  ;;  %1969 = vmatprep.mubr.f32.mxu0 %v4451_v0 }
  0xe4   : > { %4161 = vmatmul.mubr.msk.f32.vlgmr.msra.gmra.mxu1 %vm289_vm1, %v4844_v63  ;;  %4167 = vmatmul.mubr.msk.f32.vlgmr.msra.gmra.mxu0 %vm289_vm1, %v4844_v63 }
  0xe5   : > { %4172 = vmatpush1.msk.msra.mxu1 %vm302_vm0, %v1996_v12  ;;  %1878 = vmatprep.mubr.f32.mxu1 %v4451_v0  ;;  %v216_v12 = vld [vmem:[%s4570_s4 + $0x28] sm:$0xff] }
  0xe6   : > { %1975 = vmatprep.mubr.f32.mxu0 %v4451_v0  ;;  %4178 = vmatpush1.msk.msra.mxu0 %vm302_vm0, %v2093_v13  ;;  %v224_v13 = vld [vmem:[%s4570_s4 + $0x78] sm:$0xff] }
  0xe7   : > { %4183 = vmatprep.subr.msk.mxu1 %vm302_vm0, %v2191_v14  ;;  %4189 = vmatprep.subr.msk.mxu0 %vm302_vm0, %v2296_v15 }
  0xe8   : > { %4162 = vmatmul.mubr.msk.f32.gmra.mxu1 %vm289_vm1, %v4853_v5  ;;  %4168 = vmatmul.mubr.msk.f32.gmra.mxu0 %vm289_vm1, %v4853_v5 }
  0xe9   : > { %1884 = vmatprep.mubr.f32.mxu1 %v4451_v0  ;;  %1981 = vmatprep.mubr.f32.mxu0 %v4451_v0 }
  0xec   : > { %4163 = vmatmul.mubr.msk.f32.gmra.mxu1 %vm289_vm1, %v4864_v6  ;;  %4169 = vmatmul.mubr.msk.f32.gmra.mxu0 %vm289_vm1, %v4864_v6 }
  0xed   : > { %1890 = vmatprep.mubr.f32.mxu1 %v4451_v0  ;;  %1987 = vmatprep.mubr.f32.mxu0 %v4451_v0 }
  0xf0   : > { %4164 = vmatmul.mubr.msk.f32.gmra.mxu1 %vm289_vm1, %v4872_v7  ;;  %4170 = vmatmul.mubr.msk.f32.gmra.mxu0 %vm289_vm1, %v4872_v7 }
  0xf1   : > { %2066 = vmatprep.mubr.f32.mxu1 %v4451_v0  ;;  %2163 = vmatprep.mubr.f32.mxu0 %v4451_v0 }
  0xf4   : > { %4173 = vmatmul.mubr.msk.f32.vlgmr.msra.gmra.mxu1 %vm289_vm1, %v4844_v63  ;;  %4179 = vmatmul.mubr.msk.f32.vlgmr.msra.gmra.mxu0 %vm289_vm1, %v4844_v63  ;;  %v4922_v24 = vpop.f32.mrf.mxu0  ;;  %v4983_v45 = vpop.f32.mrf.mxu1 }
  0xf5   : > { %4184 = vmatpush1.msk.msra.mxu1 %vm302_vm0, %v2190_v20  ;;  %2072 = vmatprep.mubr.f32.mxu1 %v4451_v0  ;;  %v213_v20 = vld [vmem:[%s4570_s4 + $0x10] sm:$0xff] }
  0xf6   : > { %2169 = vmatprep.mubr.f32.mxu0 %v4451_v0  ;;  %4190 = vmatpush1.msk.msra.mxu0 %vm302_vm0, %v2295_v21  ;;  %v4928_v25 = vpop.f32.mrf.mxu0  ;;  %v5000_v49 = vpop.f32.mrf.mxu1  ;;  %v230_v21 = vld [vmem:[%s4570_s4 + $0xb8] sm:$0xff] }
  0xf7   : > { %4195 = vmatprep.subr.msk.mxu1 %vm302_vm0, %v2401_v22  ;;  %4201 = vmatprep.subr.msk.mxu0 %vm302_vm0, %v2498_v23 }
  0xf8   : > { %4174 = vmatmul.mubr.msk.f32.gmra.mxu1 %vm289_vm1, %v4853_v5  ;;  %4180 = vmatmul.mubr.msk.f32.gmra.mxu0 %vm289_vm1, %v4853_v5  ;;  %v4936_v26 = vpop.f32.mrf.mxu0 }
  0xf9   : > { %2078 = vmatprep.mubr.f32.mxu1 %v4451_v0  ;;  %2175 = vmatprep.mubr.f32.mxu0 %v4451_v0 }
  0xfa   : > { %v4940_v27 = vpop.f32.mrf.mxu0 }
  0xfb   : > { %v5019_v55 = vpop.f32.mrf.mxu1 }
  0xfc   : > { %4175 = vmatmul.mubr.msk.f32.gmra.mxu1 %vm289_vm1, %v4864_v6  ;;  %4181 = vmatmul.mubr.msk.f32.gmra.mxu0 %vm289_vm1, %v4864_v6  ;;  %v4946_v28 = vpop.f32.mrf.mxu0 }
  0xfd   : > { %2084 = vmatprep.mubr.f32.mxu1 %v4451_v0  ;;  %2181 = vmatprep.mubr.f32.mxu0 %v4451_v0  ;;  %v5031_v61 = vpop.f32.mrf.mxu1 }
  0xfe   : > { %v4951_v30 = vpop.f32.mrf.mxu0 }
  0xff   : > { %v5044_v2 = vpop.f32.mrf.mxu1 }
 0x100   : > { %4176 = vmatmul.mubr.msk.f32.gmra.mxu1 %vm289_vm1, %v4872_v7  ;;  %4182 = vmatmul.mubr.msk.f32.gmra.mxu0 %vm289_vm1, %v4872_v7  ;;  %v4960_v35 = vpop.f32.mrf.mxu0  ;;  %6132 = vst [vmem:[#allocation9_spill] sm:$0xff] %v5044_v2 }
 0x101   : > { %2260 = vmatprep.mubr.f32.mxu1 %v4451_v0  ;;  %2373 = vmatprep.mubr.f32.mxu0 %v4451_v0  ;;  %v5055_v4 = vpop.f32.mrf.mxu1 }
 0x102   : > { %v4969_v40 = vpop.f32.mrf.mxu0  ;;  %6134 = vst [vmem:[#allocation11_spill] sm:$0xff] %v5055_v4 }
 0x104   : > { %4185 = vmatmul.mubr.msk.f32.vlgmr.msra.gmra.mxu1 %vm289_vm1, %v4844_v63  ;;  %4191 = vmatmul.mubr.msk.f32.vlgmr.msra.gmra.mxu0 %vm289_vm1, %v4965_v37  ;;  %v4975_v43 = vpop.f32.mrf.mxu0  ;;  %v218_v63 = vld [vmem:[%s4570_s4 + $0x38] sm:$0xff] }
 0x105   : > { %4196 = vmatpush1.msk.msra.mxu1 %vm302_vm0, %v2400_v38  ;;  %2266 = vmatprep.mubr.f32.mxu1 %v4451_v0  ;;  %v229_v38 = vld [vmem:[%s4570_s4 + $0xb0] sm:$0xff] }
 0x106   : > { %2379 = vmatprep.mubr.f32.mxu0 %v4451_v0  ;;  %4202 = vmatpush1.msk.msra.mxu0 %vm302_vm0, %v2497_v39  ;;  %v4994_v47 = vpop.f32.mrf.mxu0 }
 0x107   : > { %4207 = vmatprep.subr.msk.mxu1 %vm302_vm0, %v2595_v41  ;;  %4213 = vmatprep.subr.msk.mxu0 %vm302_vm0, %v2692_v42  ;;  %v5138_v41 = vpop.permute.xlu1 %2885 }
 0x108   : > { %4186 = vmatmul.mubr.msk.f32.gmra.mxu1 %vm289_vm1, %v4853_v5  ;;  %4192 = vmatmul.mubr.msk.f32.gmra.mxu0 %vm289_vm1, %v4978_v44  ;;  %v5009_v51 = vpop.f32.mrf.mxu0 }
 0x109   : > { %2272 = vmatprep.mubr.f32.mxu1 %v4451_v0  ;;  %2385 = vmatprep.mubr.f32.mxu0 %v4451_v0 }
 0x10a   : > { %v5027_v58 = vpop.f32.mrf.mxu0 }
 0x10c   : > { %4187 = vmatmul.mubr.msk.f32.gmra.mxu1 %vm289_vm1, %v4864_v6  ;;  %4193 = vmatmul.mubr.msk.f32.gmra.mxu0 %vm289_vm1, %v4996_v48  ;;  %v5038_v1 = vpop.f32.mrf.mxu0  ;;  %v1685_v6 = vld [vmem:[%s4570_s4 + $0x140] sm:$0xc0] }
 0x10d   : > { %2278 = vmatprep.mubr.f32.mxu1 %v4451_v0  ;;  %2391 = vmatprep.mubr.f32.mxu0 %v4451_v0  ;;  %6131 = vst [vmem:[#allocation8_spill] sm:$0xff] %v5038_v1  ;;  %v2788_v9 = vrot.slane %v1685_v6, 6 }
 0x10e   : > { %v5051_v3 = vpop.f32.mrf.mxu0 }
 0x10f   : > { %6133 = vst [vmem:[#allocation10_spill] sm:$0xff] %v5051_v3 }
 0x110   : > { %4188 = vmatmul.mubr.msk.f32.gmra.mxu1 %vm289_vm1, %v4872_v7  ;;  %4194 = vmatmul.mubr.msk.f32.gmra.mxu0 %vm289_vm1, %v5014_v53  ;;  %v5061_v5 = vpop.f32.mrf.mxu0  ;;  %v5066_v7 = vpop.f32.mrf.mxu1 }
 0x111   : > { %2470 = vmatprep.mubr.f32.mxu1 %v4451_v0  ;;  %2567 = vmatprep.mubr.f32.mxu0 %v4451_v0  ;;  %6135 = vst [vmem:[#allocation12_spill] sm:$0xff] %v5061_v5  ;;  %6136 = vst [vmem:[#allocation13_spill] sm:$0xff] %v5066_v7 }
 0x112   : > { %v5072_v8 = vpop.f32.mrf.mxu0  ;;  %v5076_v10 = vpop.f32.mrf.mxu1 }
 0x113   : > { %6137 = vst [vmem:[#allocation14_spill] sm:$0xff] %v5072_v8  ;;  %6138 = vst [vmem:[#allocation15_spill] sm:$0xff] %v5076_v10 }
 0x114   : > { %4197 = vmatmul.mubr.msk.f32.vlgmr.msra.gmra.mxu1 %vm289_vm1, %v4965_v37  ;;  %4203 = vmatmul.mubr.msk.f32.vlgmr.msra.gmra.mxu0 %vm289_vm1, %v4965_v37  ;;  %v5085_v14 = vpop.f32.mrf.mxu0  ;;  %v5090_v15 = vpop.f32.mrf.mxu1 }
 0x115   : > { %4208 = vmatpush1.msk.msra.mxu1 %vm302_vm0, %v2594_v59  ;;  %2476 = vmatprep.mubr.f32.mxu1 %v4451_v0  ;;  %6139 = vst [vmem:[#allocation16_spill] sm:$0xff] %v5085_v14  ;;  %6140 = vst [vmem:[#allocation17_spill] sm:$0xff] %v5090_v15  ;;  %v236_v59 = vld [vmem:[%s4570_s4 + $0xf8] sm:$0xff] }
 0x116   : > { %2573 = vmatprep.mubr.f32.mxu0 %v4451_v0  ;;  %4214 = vmatpush1.msk.msra.mxu0 %vm302_vm0, %v2691_v60  ;;  %v5098_v18 = vpop.f32.mrf.mxu0  ;;  %v5102_v19 = vpop.f32.mrf.mxu1  ;;  %v225_v60 = vld [vmem:[%s4570_s4 + $0x90] sm:$0xff] }
 0x117   : > { %4219 = vmatprep.subr.msk.mxu1 %vm302_vm0, %v2789_v62  ;;  %2926 = vmatprep.subr.mxu0 %v218_v63  ;;  %6141 = vst [vmem:[#allocation18_spill] sm:$0xff] %v5098_v18  ;;  %6142 = vst [vmem:[#allocation19_spill] sm:$0xff] %v5102_v19  ;;  %v5169_v63 = vpop.permute.xlu1 %2889 }
 0x118   : > { %4198 = vmatmul.mubr.msk.f32.gmra.mxu1 %vm289_vm1, %v4978_v44  ;;  %4204 = vmatmul.mubr.msk.f32.gmra.mxu0 %vm289_vm1, %v4978_v44  ;;  %v5110_v22 = vpop.f32.mrf.mxu0  ;;  %v5114_v23 = vpop.f32.mrf.mxu1 }
 0x119   : > { %2482 = vmatprep.mubr.f32.mxu1 %v4451_v0  ;;  %2579 = vmatprep.mubr.f32.mxu0 %v4451_v0  ;;  %6143 = vst [vmem:[#allocation20_spill] sm:$0xff] %v5110_v22  ;;  %6144 = vst [vmem:[#allocation21_spill] sm:$0xff] %v5114_v23 }
 0x11a   : > { %v5120_v29 = vpop.f32.mrf.mxu0  ;;  %v5127_v33 = vpop.f32.mrf.mxu1 }
 0x11b   : > { %6145 = vst [vmem:[#allocation22_spill] sm:$0xff] %v5120_v29  ;;  %6146 = vst [vmem:[#allocation23_spill] sm:$0xff] %v5127_v33 }
 0x11c   : > { %4199 = vmatmul.mubr.msk.f32.gmra.mxu1 %vm289_vm1, %v4996_v48  ;;  %4205 = vmatmul.mubr.msk.f32.gmra.mxu0 %vm289_vm1, %v4996_v48  ;;  %v5136_v39 = vpop.f32.mrf.mxu0  ;;  %v5142_v42 = vpop.f32.mrf.mxu1 }
 0x11d   : > { %2488 = vmatprep.mubr.f32.mxu1 %v4451_v0  ;;  %2585 = vmatprep.mubr.f32.mxu0 %v4451_v0  ;;  %6147 = vst [vmem:[#allocation24_spill] sm:$0xff] %v5136_v39  ;;  %6148 = vst [vmem:[#allocation25_spill] sm:$0xff] %v5142_v42 }
 0x11e   : > { %v5152_v54 = vpop.f32.mrf.mxu0  ;;  %v5158_v57 = vpop.f32.mrf.mxu1 }
 0x11f   : > { %6149 = vst [vmem:[#allocation26_spill] sm:$0xff] %v5152_v54  ;;  %6150 = vst [vmem:[#allocation27_spill] sm:$0xff] %v5158_v57 }
 0x120   : > { %4200 = vmatmul.mubr.msk.f32.gmra.mxu1 %vm289_vm1, %v5014_v53  ;;  %4206 = vmatmul.mubr.msk.f32.gmra.mxu0 %vm289_vm1, %v5014_v53  ;;  %v5167_v62 = vpop.f32.mrf.mxu0  ;;  %v5173_v6 = vpop.f32.mrf.mxu1 }
 0x121   : > { %2664 = vmatprep.mubr.f32.mxu1 %v4451_v0  ;;  %2761 = vmatprep.mubr.f32.mxu0 %v4451_v0  ;;  %6151 = vst [vmem:[#allocation28_spill] sm:$0xff] %v5167_v62  ;;  %6152 = vst [vmem:[#allocation29_spill] sm:$0xff] %v5173_v6 }
 0x124   : > { %4209 = vmatmul.mubr.msk.f32.vlgmr.msra.gmra.mxu1 %vm289_vm1, %v4965_v37  ;;  %4215 = vmatmul.mubr.msk.f32.vlgmr.msra.gmra.mxu0 %vm289_vm1, %v4965_v37 }
 0x125   : > { %4220 = vmatpush1.msk.msra.mxu1 %vm302_vm0, %v2788_v9  ;;  %2670 = vmatprep.mubr.f32.mxu1 %v4451_v0  ;;  %v5180_v9 = vpop.f32.mrf.mxu0 }
 0x126   : > { %2767 = vmatprep.mubr.f32.mxu0 %v4451_v0  ;;  %2927 = vmatpush1.msra.mxu0 %v217_v11  ;;  %6153 = vst [vmem:[#allocation30_spill] sm:$0xff] %v5180_v9  ;;  %v235_v11 = vld [vmem:[%s4570_s4 + $0xf0] sm:$0xff] }
 0x127   : > { %2928 = vmatprep.subr.mxu0 %v216_v12  ;;  %3015 = vmatprep.subr.mxu1 %v224_v13  ;;  %v5185_v12 = vpop.f32.mrf.mxu1  ;;  %v234_v13 = vld [vmem:[%s4570_s4 + $0xe8] sm:$0xff] }
 0x128   : > { %4210 = vmatmul.mubr.msk.f32.gmra.mxu1 %vm289_vm1, %v4978_v44  ;;  %4216 = vmatmul.mubr.msk.f32.gmra.mxu0 %vm289_vm1, %v4978_v44  ;;  %6154 = vst [vmem:[#allocation31_spill] sm:$0xff] %v5185_v12 }
 0x129   : > { %2676 = vmatprep.mubr.f32.mxu1 %v4451_v0  ;;  %2773 = vmatprep.mubr.f32.mxu0 %v4451_v0 }
 0x12a   : > { %2929 = vmatpush1.msra.mxu0 %v215_v16  ;;  %v241_v16 = vld [vmem:[%s4570_s4 + $0x130] sm:$0xff] }
 0x12b   : > { %2930 = vmatprep.subr.mxu0 %v214_v17  ;;  %v5194_v17 = vpop.f32.mrf.mxu0 }
 0x12c   : > { %4211 = vmatmul.mubr.msk.f32.gmra.mxu1 %vm289_vm1, %v4996_v48  ;;  %4217 = vmatmul.mubr.msk.f32.gmra.mxu0 %vm289_vm1, %v4996_v48  ;;  %6155 = vst [vmem:[#allocation32_spill] sm:$0xff] %v5194_v17 }
 0x12d   : > { %2682 = vmatprep.mubr.f32.mxu1 %v4451_v0  ;;  %2779 = vmatprep.mubr.f32.mxu0 %v4451_v0 }
 0x12e   : > { %2931 = vmatpush1.msra.mxu0 %v213_v20  ;;  %v5198_v20 = vpop.f32.mrf.mxu1 }
 0x12f   : > { %3104 = vmatprep.subr.mxu0 %v230_v21  ;;  %6156 = vst [vmem:[#allocation33_spill] sm:$0xff] %v5198_v20  ;;  %v232_v21 = vld [vmem:[%s4570_s4 + $0xd8] sm:$0xff] }
 0x130   : > { %4212 = vmatmul.mubr.msk.f32.gmra.mxu1 %vm289_vm1, %v5014_v53  ;;  %4218 = vmatmul.mubr.msk.f32.gmra.mxu0 %vm289_vm1, %v5014_v53 }
 0x131   : > { %2858 = vmatprep.mubr.f32.mxu1 %v4451_v0  ;;  %2964 = vmatprep.mubr.f32.mxu0 %v4451_v0 }
 0x134   : > { %4221 = vmatmul.mubr.msk.f32.vlgmr.msra.gmra.mxu1 %vm289_vm1, %v4965_v37  ;;  %4225 = vmatmul.mubr.msk.f32.vlgmr.msra.gmra.mxu0 %vm2891_vm2, %v5122_v31  ;;  %v220_v37 = vld [vmem:[%s4570_s4 + $0x58] sm:$0xff] }
 0x135   : > { %3016 = vmatpush1.msra.mxu1 %v223_v32  ;;  %2864 = vmatprep.mubr.f32.mxu1 %v4451_v0  ;;  %v240_v32 = vld [vmem:[%s4570_s4 + $0x128] sm:$0xff] }
 0x136   : > { %2970 = vmatprep.mubr.f32.mxu0 %v4451_v0  ;;  %3017 = vmatprep.subr.mxu1 %v222_v34  ;;  %v231_v34 = vld [vmem:[%s4570_s4 + $0xd0] sm:$0xff] }
 0x137   : > { %3018 = vmatpush1.msra.mxu1 %v221_v36  ;;  %3105 = vmatpush1.msra.mxu0 %v229_v38  ;;  %v239_v36 = vld [vmem:[%s4570_s4 + $0x120] sm:$0xff]  ;;  %v5208_v38 = vpop.f32.mrf.mxu0 }
 0x138   : > { %4222 = vmatmul.mubr.msk.f32.gmra.mxu1 %vm289_vm1, %v4978_v44  ;;  %4226 = vmatmul.mubr.msk.f32.gmra.mxu0 %vm2891_vm2, %v5138_v41  ;;  %v226_v44 = vld [vmem:[%s4570_s4 + $0x98] sm:$0xff]  ;;  %6157 = vst [vmem:[#allocation34_spill] sm:$0xff] %v5208_v38 }
 0x139   : > { %2870 = vmatprep.mubr.f32.mxu1 %v4451_v0  ;;  %2976 = vmatprep.mubr.f32.mxu0 %v4451_v0 }
 0x13a   : > { %3019 = vmatprep.subr.mxu1 %v220_v37  ;;  %3106 = vmatprep.subr.mxu0 %v228_v46  ;;  %v5212_v37 = vpop.f32.mrf.mxu1  ;;  %v238_v46 = vld [vmem:[%s4570_s4 + $0x118] sm:$0xff] }
 0x13b   : > { %3020 = vmatpush1.msra.mxu1 %v219_v50  ;;  %3107 = vmatpush1.msra.mxu0 %v227_v52  ;;  %6158 = vst [vmem:[#allocation35_spill] sm:$0xff] %v5212_v37  ;;  %v248_v50 = vld [vmem:[%s4570_s4 + $0x178] sm:$0xff]  ;;  %v237_v52 = vld [vmem:[%s4570_s4 + $0x110] sm:$0xff] }
 0x13c   : > { %4223 = vmatmul.mubr.msk.f32.gmra.mxu1 %vm289_vm1, %v4996_v48  ;;  %4227 = vmatmul.mubr.msk.f32.gmra.mxu0 %vm2891_vm2, %v5154_v56  ;;  %v242_v48 = vld [vmem:[%s4570_s4 + $0x138] sm:$0xff] }
 0x13d   : > { %2876 = vmatprep.mubr.f32.mxu1 %v4451_v0  ;;  %2982 = vmatprep.mubr.f32.mxu0 %v4451_v0 }
 0x13e   : > { %3108 = vmatprep.subr.mxu0 %v226_v44  ;;  %3193 = vmatprep.subr.mxu1 %v236_v59  ;;  %v5221_v44 = vpop.f32.mrf.mxu0  ;;  %v5225_v59 = vpop.f32.mrf.mxu1 }
 0x13f   : > { %3109 = vmatpush1.msra.mxu0 %v225_v60  ;;  %6159 = vst [vmem:[#allocation36_spill] sm:$0xff] %v5221_v44  ;;  %6160 = vst [vmem:[#allocation37_spill] sm:$0xff] %v5225_v59  ;;  %v254_v60 = vld [vmem:[%s4570_s4 + $0x1b8] sm:$0xff] }
 0x140   : > { %4224 = vmatmul.mubr.msk.f32.gmra.mxu1 %vm289_vm1, %v5014_v53  ;;  %4228 = vmatmul.mubr.msk.f32.gmra.mxu0 %vm2891_vm2, %v5169_v63  ;;  %v233_v53 = vld [vmem:[%s4570_s4 + $0xe0] sm:$0xff] }
 0x141   : > { %3053 = vmatprep.mubr.f32.mxu1 %v4451_v0  ;;  %3142 = vmatprep.mubr.f32.mxu0 %v4451_v0 }
 0x142   : > { %3282 = vmatprep.subr.mxu0 %v242_v48  ;;  %v5232_v48 = vpop.f32.mrf.mxu0 }
 0x143   : > { %6161 = vst [vmem:[#allocation38_spill] sm:$0xff] %v5232_v48 }
 0x144   : > { %4229 = vmatmul.mubr.msk.f32.vlgmr.msra.gmra.mxu1 %vm2891_vm2, %v5122_v31  ;;  %4233 = vmatmul.mubr.msk.f32.vlgmr.msra.gmra.mxu0 %vm2891_vm2, %v5122_v31 }
 0x145   : > { %3194 = vmatpush1.msra.mxu1 %v235_v11  ;;  %3059 = vmatprep.mubr.f32.mxu1 %v4451_v0  ;;  %v247_v11 = vld [vmem:[%s4570_s4 + $0x170] sm:$0xff] }
 0x146   : > { %3148 = vmatprep.mubr.f32.mxu0 %v4451_v0  ;;  %3195 = vmatprep.subr.mxu1 %v234_v13  ;;  %v5237_v13 = vpop.f32.mrf.mxu1 }
 0x147   : > { %3196 = vmatpush1.msra.mxu1 %v233_v53  ;;  %3283 = vmatpush1.msra.mxu0 %v241_v16  ;;  %6162 = vst [vmem:[#allocation39_spill] sm:$0xff] %v5237_v13  ;;  %v246_v53 = vld [vmem:[%s4570_s4 + $0x168] sm:$0xff]  ;;  %v245_v16 = vld [vmem:[%s4570_s4 + $0x160] sm:$0xff] }
 0x148   : > { %4230 = vmatmul.mubr.msk.f32.gmra.mxu1 %vm2891_vm2, %v5138_v41  ;;  %4234 = vmatmul.mubr.msk.f32.gmra.mxu0 %vm2891_vm2, %v5138_v41 }
 0x149   : > { %3065 = vmatprep.mubr.f32.mxu1 %v4451_v0  ;;  %3154 = vmatprep.mubr.f32.mxu0 %v4451_v0 }
 0x14a   : > { %3197 = vmatprep.subr.mxu1 %v232_v21  ;;  %3284 = vmatprep.subr.mxu0 %v240_v32  ;;  %v5245_v21 = vpop.f32.mrf.mxu0  ;;  %v253_v32 = vld [vmem:[%s4570_s4 + $0x1b0] sm:$0xff] }
 0x14b   : > { %3198 = vmatpush1.msra.mxu1 %v231_v34  ;;  %3285 = vmatpush1.msra.mxu0 %v239_v36  ;;  %6163 = vst [vmem:[#allocation40_spill] sm:$0xff] %v5245_v21  ;;  %v5250_v34 = vpop.f32.mrf.mxu1  ;;  %v244_v36 = vld [vmem:[%s4570_s4 + $0x158] sm:$0xff] }
 0x14c   : > { %4231 = vmatmul.mubr.msk.f32.gmra.mxu1 %vm2891_vm2, %v5154_v56  ;;  %4235 = vmatmul.mubr.msk.f32.gmra.mxu0 %vm2891_vm2, %v5154_v56  ;;  %6164 = vst [vmem:[#allocation41_spill] sm:$0xff] %v5250_v34 }
 0x14d   : > { %3071 = vmatprep.mubr.f32.mxu1 %v4451_v0  ;;  %3160 = vmatprep.mubr.f32.mxu0 %v4451_v0 }
 0x14e   : > { %3286 = vmatprep.subr.mxu0 %v238_v46  ;;  %3371 = vmatprep.subr.mxu1 %v248_v50  ;;  %v252_v46 = vld [vmem:[%s4570_s4 + $0x1a8] sm:$0xff]  ;;  %v5258_v50 = vpop.f32.mrf.mxu0 }
 0x14f   : > { %3287 = vmatpush1.msra.mxu0 %v237_v52  ;;  %6165 = vst [vmem:[#allocation42_spill] sm:$0xff] %v5258_v50  ;;  %v243_v52 = vld [vmem:[%s4570_s4 + $0x150] sm:$0xff] }
 0x150   : > { %4232 = vmatmul.mubr.msk.f32.gmra.mxu1 %vm2891_vm2, %v5169_v63  ;;  %4236 = vmatmul.mubr.msk.f32.gmra.mxu0 %vm2891_vm2, %v5169_v63  ;;  %v249_v50 = vld [vmem:[%s4570_s4 + $0x190] sm:$0xff] }
 0x151   : > { %3231 = vmatprep.mubr.f32.mxu1 %v4451_v0  ;;  %3320 = vmatprep.mubr.f32.mxu0 %v4451_v0 }
 0x152   : > { %3460 = vmatprep.subr.mxu0 %v254_v60  ;;  %v251_v60 = vld [vmem:[%s4570_s4 + $0x1a0] sm:$0xff] }
 0x154   : > { %4237 = vmatmul.mubr.msk.f32.vlgmr.msra.gmra.mxu1 %vm2891_vm2, %v5122_v31  ;;  %4241 = vmatmul.mubr.msk.f32.vlgmr.msra.gmra.mxu0 %vm2891_vm2, %v5122_v31 }
 0x155   : > { %3372 = vmatpush1.msra.mxu1 %v247_v11  ;;  %3237 = vmatprep.mubr.f32.mxu1 %v4451_v0  ;;  %v5264_v11 = vpop.f32.mrf.mxu1 }
 0x156   : > { %3326 = vmatprep.mubr.f32.mxu0 %v4451_v0  ;;  %3373 = vmatprep.subr.mxu1 %v246_v53  ;;  %6166 = vst [vmem:[#allocation43_spill] sm:$0xff] %v5264_v11  ;;  %v250_v53 = vld [vmem:[%s4570_s4 + $0x198] sm:$0xff] }
 0x157   : > { %3374 = vmatpush1.msra.mxu1 %v245_v16  ;;  %3461 = vmatpush1.msra.mxu0 %v253_v32  ;;  %v260_v16 = vld [vmem:[%s4570_s4 + $0x1f8] sm:$0xff]  ;;  %v5272_v32 = vpop.f32.mrf.mxu0 }
 0x158   : > { %4238 = vmatmul.mubr.msk.f32.gmra.mxu1 %vm2891_vm2, %v5138_v41  ;;  %4242 = vmatmul.mubr.msk.f32.gmra.mxu0 %vm2891_vm2, %v5138_v41  ;;  %6167 = vst [vmem:[#allocation44_spill] sm:$0xff] %v5272_v32  ;;  %v258_v32 = vld [vmem:[%s4570_s4 + $0x1e8] sm:$0xff] }
 0x159   : > { %3243 = vmatprep.mubr.f32.mxu1 %v4451_v0  ;;  %3332 = vmatprep.mubr.f32.mxu0 %v4451_v0 }
 0x15a   : > { %3375 = vmatprep.subr.mxu1 %v244_v36  ;;  %3462 = vmatprep.subr.mxu0 %v252_v46  ;;  %v5277_v36 = vpop.f32.mrf.mxu1  ;;  %v5283_v46 = vpop.f32.mrf.mxu0 }
 0x15b   : > { %3376 = vmatpush1.msra.mxu1 %v243_v52  ;;  %3463 = vmatpush1.msra.mxu0 %v251_v60  ;;  %6168 = vst [vmem:[#allocation45_spill] sm:$0xff] %v5277_v36  ;;  %6169 = vst [vmem:[#allocation46_spill] sm:$0xff] %v5283_v46  ;;  %v259_v60 = vld [vmem:[%s4570_s4 + $0x1f0] sm:$0xff]  ;;  %v256_v36 = vld [vmem:[%s4570_s4 + $0x1d8] sm:$0xff] }
 0x15c   : > { %4239 = vmatmul.mubr.msk.f32.gmra.mxu1 %vm2891_vm2, %v5154_v56  ;;  %4243 = vmatmul.mubr.msk.f32.gmra.mxu0 %vm2891_vm2, %v5154_v56  ;;  %v5287_v52 = vpop.f32.mrf.mxu1 }
 0x15d   : > { %3249 = vmatprep.mubr.f32.mxu1 %v4451_v0  ;;  %3338 = vmatprep.mubr.f32.mxu0 %v4451_v0  ;;  %6170 = vst [vmem:[#allocation47_spill] sm:$0xff] %v5287_v52 }
 0x15e   : > { %3464 = vmatprep.subr.mxu0 %v250_v53  ;;  %3549 = vmatprep.subr.mxu1 %v260_v16  ;;  %v257_v16 = vld [vmem:[%s4570_s4 + $0x1e0] sm:$0xff] }
 0x15f   : > { %3465 = vmatpush1.msra.mxu0 %v249_v50 }
 0x160   : > { %4240 = vmatmul.mubr.msk.f32.gmra.mxu1 %vm2891_vm2, %v5169_v63  ;;  %4244 = vmatmul.mubr.msk.f32.gmra.mxu0 %vm2891_vm2, %v5169_v63 }
 0x161   : > { %3409 = vmatprep.mubr.f32.mxu1 %v4451_v0  ;;  %3498 = vmatprep.mubr.f32.mxu0 %v4451_v0 }
 0x164   : > { %v5291_v53 = vpop.f32.mrf.mxu1  ;;  %v5293_v50 = vpop.f32.mrf.mxu0  ;;  %4245 = vmatmul.mubr.msk.f32.vlgmr.msra.gmra.mxu1 %vm2891_vm2, %v5122_v31  ;;  %4249 = vmatmul.mubr.msk.f32.vlgmr.msra.gmra.mxu0 %vm2891_vm2, %v5122_v31 }
 0x165   : > { %3550 = vmatpush1.msra.mxu1 %v259_v60  ;;  %3415 = vmatprep.mubr.f32.mxu1 %v4451_v0  ;;  %v255_v60 = vld [vmem:[%s4570_s4 + $0x1d0] sm:$0xff]  ;;  %s5652_s4 = scalar_lea.vmem [#allocation5], %s4067_s29  ;;  %s4263_s29 = sshll.u32 %s4438_s15, 13 }
 0x166   : > { %v5301_v46 = vpop.f32.mrf.mxu1  ;;  %v5303_v52 = vpop.f32.mrf.mxu0  ;;  %3504 = vmatprep.mubr.f32.mxu0 %v4451_v0  ;;  %3551 = vmatprep.subr.mxu1 %v258_v32  ;;  %s3972_s10 = sshll.u32 %s5652_s4, 4  ;;  %s6039_s19 = scalar_lea.hbm %s6095_s3, %s4263_s29  ;;  %s6041_s10 = int_to_ptr.vmem [resolvable:$true] %s3972_s10 }
 0x167   : > { %3552 = vmatpush1.msra.mxu1 %v257_v16  ;;  %s3957_s15 = scalar_lea.sflag [#allocation4], %s4564_s28  ;;  %s4366_s21 = scalar_lea.vmem %s6041_s10, 8192 }
 0x168   : > { %v5307_v11 = vpop.f32.mrf.mxu1  ;;  %v5309_v21 = vpop.f32.mrf.mxu0  ;;  %4246 = vmatmul.mubr.msk.f32.gmra.mxu1 %vm2891_vm2, %v5138_v41  ;;  %4250 = vmatmul.mubr.msk.f32.gmra.mxu0 %vm2891_vm2, %v5138_v41  ;;  %p4367_p8 = scmp.ne.s32.totalorder %s6041_s10, %s4366_s21  ;;  %p4373_p1 = scmp.lt.s32.totalorder %s6041_s10, %s4371_s23 }
 0x169   : > { %3421 = vmatprep.mubr.f32.mxu1 %v4451_v0  ;;  %3510 = vmatprep.mubr.f32.mxu0 %v4451_v0  ;;  %p4374_p3 = scmp.lt.s32.totalorder %s4372_s30, %s4366_s21 }
 0x16a   : > { %v5318_v34 = vpop.f32.mrf.mxu1  ;;  %v5320_v32 = vpop.f32.mrf.mxu0  ;;  %3553 = vmatprep.subr.mxu1 %v256_v36  ;;  %p4368_p12 = pnand %p4367_p8, %p4531_p9 }
 0x16b   : > { %6171 = vst [vmem:[#allocation48_spill] sm:$0xff] %v5320_v32  ;;  %3554 = vmatpush1.msra.mxu1 %v255_v60  ;;  %p4375_p5 = por %p4374_p3, %p4373_p1 }
 0x16c   : > { %v5322_v16 = vpop.f32.mrf.mxu1  ;;  %v5324_v48 = vpop.f32.mrf.mxu0  ;;  %4247 = vmatmul.mubr.msk.f32.gmra.mxu1 %vm2891_vm2, %v5154_v56  ;;  %4251 = vmatmul.mubr.msk.f32.gmra.mxu0 %vm2891_vm2, %v5154_v56  ;;  %p4369_p0 = pneg %p4368_p12 }
 0x16d   : > { %6172 = vst [vmem:[#allocation49_spill] sm:$0xff] %v5324_v48  ;;  %3427 = vmatprep.mubr.f32.mxu1 %v4451_v0  ;;  %3516 = vmatprep.mubr.f32.mxu0 %v4451_v0 }
 0x16e   : > { %v5332_v13 = vpop.f32.mrf.mxu1  ;;  %v5334_v44 = vpop.f32.mrf.mxu0  ;;  %p4376_p6 = pnand %p4375_p5, %p4369_p0 }
 0x16f   : > { %6173 = vst [vmem:[#allocation50_spill] sm:$0xff] %v5334_v44 }
 0x170   : > { %v5336_v36 = vpop.f32.mrf.mxu1  ;;  %v5338_v60 = vpop.f32.mrf.mxu0  ;;  %4248 = vmatmul.mubr.msk.f32.gmra.mxu1 %vm2891_vm2, %v5169_v63  ;;  %4252 = vmatmul.mubr.msk.f32.gmra.mxu0 %vm2891_vm2, %v5169_v63 }
 0x171   : > { %6174 = vst [vmem:[#allocation51_spill] sm:$0xff] %v5338_v60  ;;  %3587 = vmatprep.mubr.f32.mxu1 %v4451_v0 }
 0x172   : > { %v5345_v59 = vpop.f32.mrf.mxu1  ;;  %v5347_v38 = vpop.f32.mrf.mxu0 }
 0x173   : > { %6175 = vst [vmem:[#allocation52_spill] sm:$0xff] %v5347_v38 }
 0x174   : > { %v5349_v37 = vpop.f32.mrf.mxu1  ;;  %v5351_v17 = vpop.f32.mrf.mxu0  ;;  %4253 = vmatmul.mubr.msk.f32.vlgmr.msra.gmra.mxu1 %vm2891_vm2, %v5122_v31 }
 0x175   : > { %6176 = vst [vmem:[#allocation53_spill] sm:$0xff] %v5349_v37  ;;  %6177 = vst [vmem:[#allocation54_spill] sm:$0xff] %v5351_v17  ;;  %3593 = vmatprep.mubr.f32.mxu1 %v4451_v0 }
 0x176   : > { %v5356_v20 = vpop.f32.mrf.mxu1  ;;  %v5358_v9 = vpop.f32.mrf.mxu0 }
 0x177   : > { %6178 = vst [vmem:[#allocation55_spill] sm:$0xff] %v5356_v20  ;;  %6179 = vst [vmem:[#allocation56_spill] sm:$0xff] %v5358_v9 }
 0x178   : > { %v5360_v12 = vpop.f32.mrf.mxu1  ;;  %v5362_v62 = vpop.f32.mrf.mxu0  ;;  %4254 = vmatmul.mubr.msk.f32.gmra.mxu1 %vm2891_vm2, %v5138_v41 }
 0x179   : > { %6180 = vst [vmem:[#allocation57_spill] sm:$0xff] %v5360_v12  ;;  %6181 = vst [vmem:[#allocation58_spill] sm:$0xff] %v5362_v62  ;;  %3599 = vmatprep.mubr.f32.mxu1 %v4451_v0 }
 0x17a   : > { %v5367_v6 = vpop.f32.mrf.mxu1  ;;  %v5369_v54 = vpop.f32.mrf.mxu0 }
 0x17b   : > { %6182 = vst [vmem:[#allocation59_spill] sm:$0xff] %v5367_v6  ;;  %6183 = vst [vmem:[#allocation60_spill] sm:$0xff] %v5369_v54 }
 0x17c   : > { %v5371_v31 = vpop.f32.mrf.mxu1  ;;  %v5373_v57 = vpop.f32.mrf.mxu0  ;;  %4255 = vmatmul.mubr.msk.f32.gmra.mxu1 %vm2891_vm2, %v5154_v56 }
 0x17d   : > { %6184 = vst [vmem:[#allocation61_spill] sm:$0xff] %v5371_v31  ;;  %6185 = vst [vmem:[#allocation62_spill] sm:$0xff] %v5373_v57  ;;  %3605 = vmatprep.mubr.f32.mxu1 %v4451_v0 }
 0x17e   : > { %v5378_v39 = vpop.f32.mrf.mxu1  ;;  %v5380_v42 = vpop.f32.mrf.mxu0 }
 0x17f   : > { %6186 = vst [vmem:[#allocation63_spill] sm:$0xff] %v5378_v39  ;;  %6187 = vst [vmem:[#allocation64_spill] sm:$0xff] %v5380_v42 }
 0x180   : > { %v5382_v41 = vpop.f32.mrf.mxu1  ;;  %v5384_v29 = vpop.f32.mrf.mxu0  ;;  %4256 = vmatmul.mubr.msk.f32.gmra.mxu1 %vm2891_vm2, %v5169_v63 }
 0x181   : > { %6188 = vst [vmem:[#allocation65_spill] sm:$0xff] %v5382_v41  ;;  %6189 = vst [vmem:[#allocation66_spill] sm:$0xff] %v5384_v29 }
 0x182   : > { %v5388_v54 = vpop.f32.mrf.mxu1  ;;  %v5390_v31 = vpop.f32.mrf.mxu0 }
 0x183   : > { %6190 = vst [vmem:[#allocation67_spill] sm:$0xff] %v5388_v54  ;;  %6191 = vst [vmem:[#allocation68_spill] sm:$0xff] %v5390_v31 }
 0x184   : > { %v5392_v57 = vpop.f32.mrf.mxu1  ;;  %v5394_v56 = vpop.f32.mrf.mxu0 }
 0x185   : > { %6192 = vst [vmem:[#allocation69_spill] sm:$0xff] %v5392_v57  ;;  %6193 = vst [vmem:[#allocation70_spill] sm:$0xff] %v5394_v56 }
 0x186   : > { %v5396_v0 = vpop.f32.mrf.mxu1  ;;  %v5398_v39 = vpop.f32.mrf.mxu0 }
 0x187   : > { %6194 = vst [vmem:[#allocation71_spill] sm:$0xff] %v5396_v0  ;;  %6195 = vst [vmem:[#allocation72_spill] sm:$0xff] %v5398_v39 }
 0x188   : > { %v5400_v42 = vpop.f32.mrf.mxu1  ;;  %v5402_v41 = vpop.f32.mrf.mxu0 }
 0x189   : > { %6196 = vst [vmem:[#allocation73_spill] sm:$0xff] %v5400_v42  ;;  %6197 = vst [vmem:[#allocation74_spill] sm:$0xff] %v5402_v41 }
 0x18a   : > { %v5404_v29 = vpop.f32.mrf.mxu1  ;;  %v5406_v6 = vpop.f32.mrf.mxu0 }
 0x18b   : > { %6198 = vst [vmem:[#allocation75_spill] sm:$0xff] %v5404_v29  ;;  %6199 = vst [vmem:[#allocation76_spill] sm:$0xff] %v5406_v6 }
 0x18c   : > { %v5408_v63 = vpop.f32.mrf.mxu1  ;;  %v5410_v54 = vpop.f32.mrf.mxu0 }
 0x18d   : > { %6200 = vst [vmem:[#allocation77_spill] sm:$0xff] %v5408_v63  ;;  %6201 = vst [vmem:[#allocation78_spill] sm:$0xff] %v5410_v54 }
 0x18e   : > { %v5412_v31 = vpop.f32.mrf.mxu1  ;;  %v5414_v57 = vpop.f32.mrf.mxu0 }
 0x18f   : > { %6202 = vst [vmem:[#allocation79_spill] sm:$0xff] %v5412_v31  ;;  %6203 = vst [vmem:[#allocation80_spill] sm:$0xff] %v5414_v57 }
 0x190   : > { %v5416_v56 = vpop.f32.mrf.mxu1  ;;  %v5418_v0 = vpop.f32.mrf.mxu0 }
 0x191   : > { %6204 = vst [vmem:[#allocation81_spill] sm:$0xff] %v5416_v56  ;;  %6205 = vst [vmem:[#allocation82_spill] sm:$0xff] %v5418_v0 }
 0x192   : > { %v5420_v39 = vpop.f32.mrf.mxu1  ;;  %v5422_v42 = vpop.f32.mrf.mxu0 }
 0x193   : > { %6206 = vst [vmem:[#allocation83_spill] sm:$0xff] %v5420_v39  ;;  %6207 = vst [vmem:[#allocation84_spill] sm:$0xff] %v5422_v42 }
 0x194   : > { %v5424_v41 = vpop.f32.mrf.mxu1  ;;  %v5426_v29 = vpop.f32.mrf.mxu0 }
 0x195   : > { %6208 = vst [vmem:[#allocation85_spill] sm:$0xff] %v5424_v41 }
 0x196   : > { %v5428_v6 = vpop.f32.mrf.mxu1  ;;  %v5430_v63 = vpop.f32.mrf.mxu0 }
 0x197   : > { %6209 = vst [vmem:[#allocation86_spill] sm:$0xff] %v5428_v6 }
 0x198   : > { %v5432_v54 = vpop.f32.mrf.mxu1  ;;  %v5434_v31 = vpop.f32.mrf.mxu0 }
 0x199   : > { %6210 = vst [vmem:[#allocation87_spill] sm:$0xff] %v5432_v54 }
 0x19a   : > { %v5436_v57 = vpop.f32.mrf.mxu1  ;;  %v5438_v56 = vpop.f32.mrf.mxu0 }
 0x19b   : > { %6211 = vst [vmem:[#allocation88_spill] sm:$0xff] %v5436_v57 }
 0x19c   : > { %v5440_v0 = vpop.f32.mrf.mxu1  ;;  %v5442_v39 = vpop.f32.mrf.mxu0 }
 0x19d   : > { %6212 = vst [vmem:[#allocation89_spill] sm:$0xff] %v5440_v0 }
 0x19e   : > { %v5444_v42 = vpop.f32.mrf.mxu1  ;;  %v5446_v41 = vpop.f32.mrf.mxu0 }
 0x19f   : > { %6213 = vst [vmem:[#allocation90_spill] sm:$0xff] %v5444_v42 }
 0x1a0   : > { %v5448_v62 = vpop.f32.mrf.mxu1  ;;  %v5450_v6 = vpop.f32.mrf.mxu0 }
 0x1a1   : > { %6214 = vst [vmem:[#allocation91_spill] sm:$0xff] %v5448_v62 }
 0x1a2   : > { %v5452_v33 = vpop.f32.mrf.mxu1  ;;  %v5454_v54 = vpop.f32.mrf.mxu0 }
 0x1a3   : > { %6215 = vst [vmem:[#allocation92_spill] sm:$0xff] %v5452_v33 }
 0x1a4   : > { %v5456_v12 = vpop.f32.mrf.mxu1  ;;  %v5458_v57 = vpop.f32.mrf.mxu0 }
 0x1a6   : > { %v5460_v22 = vpop.f32.mrf.mxu1  ;;  %v5462_v0 = vpop.f32.mrf.mxu0 }
 0x1a8   : > { %v5464_v9 = vpop.f32.mrf.mxu1  ;;  %v5466_v42 = vpop.f32.mrf.mxu0 }
 0x1aa   : > { %v5468_v20 = vpop.f32.mrf.mxu1  ;;  %v5470_v62 = vpop.f32.mrf.mxu0 }
 0x1ab   : > { %6216 = vst [vmem:[#allocation93_spill] sm:$0xff] %v5468_v20  ;;  %6217 = vst [vmem:[#allocation94_spill] sm:$0xff] %v5470_v62 }
 0x1ac   : > { %v5472_v23 = vpop.f32.mrf.mxu1  ;;  %v5474_v33 = vpop.f32.mrf.mxu0 }
 0x1ad   : > { %6218 = vst [vmem:[#allocation95_spill] sm:$0xff] %v5472_v23  ;;  %6219 = vst [vmem:[#allocation96_spill] sm:$0xff] %v5474_v33 }
 0x1ae   : > { %v5476_v18 = vpop.f32.mrf.mxu1  ;;  %v5478_v19 = vpop.f32.mrf.mxu0 }
 0x1af   : > { %6220 = vst [vmem:[#allocation97_spill] sm:$0xff] %v5476_v18  ;;  %6221 = vst [vmem:[#allocation98_spill] sm:$0xff] %v5478_v19 }
 0x1b0   : > { %v5480_v17 = vpop.f32.mrf.mxu1  ;;  %v5482_v37 = vpop.f32.mrf.mxu0 }
 0x1b1   : > { %6222 = vst [vmem:[#allocation99_spill] sm:$0xff] %v5480_v17  ;;  %6223 = vst [vmem:[#allocation100_spill] sm:$0xff] %v5482_v37 }
 0x1b2   : > { %v5484_v14 = vpop.f32.mrf.mxu1  ;;  %v5486_v15 = vpop.f32.mrf.mxu0 }
 0x1b3   : > { %6224 = vst [vmem:[#allocation101_spill] sm:$0xff] %v5484_v14  ;;  %6225 = vst [vmem:[#allocation102_spill] sm:$0xff] %v5486_v15 }
 0x1b4   : > { %v5488_v38 = vpop.f32.mrf.mxu1  ;;  %v5490_v8 = vpop.f32.mrf.mxu0 }
 0x1b5   : > { %6226 = vst [vmem:[#allocation103_spill] sm:$0xff] %v5488_v38  ;;  %6227 = vst [vmem:[#allocation104_spill] sm:$0xff] %v5490_v8 }
 0x1b6   : > { %v5492_v60 = vpop.f32.mrf.mxu1  ;;  %v5494_v10 = vpop.f32.mrf.mxu0 }
 0x1b7   : > { %6228 = vst [vmem:[#allocation105_spill] sm:$0xff] %v5492_v60  ;;  %6229 = vst [vmem:[#allocation106_spill] sm:$0xff] %v5494_v10 }
 0x1b8   : > { %v5496_v5 = vpop.f32.mrf.mxu1  ;;  %v5498_v18 = vpop.f32.mrf.mxu0 }
 0x1b9   : > { %6230 = vst [vmem:[#allocation107_spill] sm:$0xff] %v5496_v5  ;;  %6231 = vst [vmem:[#allocation108_spill] sm:$0xff] %v5498_v18 }
 0x1ba   : > { %v5500_v19 = vpop.f32.mrf.mxu1  ;;  %v5502_v17 = vpop.f32.mrf.mxu0 }
 0x1bb   : > { %6232 = vst [vmem:[#allocation109_spill] sm:$0xff] %v5500_v19  ;;  %6233 = vst [vmem:[#allocation110_spill] sm:$0xff] %v5502_v17 }
 0x1bc   : > { %v5504_v37 = vpop.f32.mrf.mxu1  ;;  %v5506_v14 = vpop.f32.mrf.mxu0 }
 0x1bd   : > { %6234 = vst [vmem:[#allocation111_spill] sm:$0xff] %v5504_v37  ;;  %6235 = vst [vmem:[#allocation112_spill] sm:$0xff] %v5506_v14 }
 0x1be   : > { %v5508_v15 = vpop.f32.mrf.mxu1  ;;  %v5510_v38 = vpop.f32.mrf.mxu0 }
 0x1bf   : > { %6236 = vst [vmem:[#allocation113_spill] sm:$0xff] %v5508_v15  ;;  %6237 = vst [vmem:[#allocation114_spill] sm:$0xff] %v5510_v38 }
 0x1c0   : > { %v5512_v8 = vpop.f32.mrf.mxu1  ;;  %v5514_v60 = vpop.f32.mrf.mxu0 }
 0x1c1   : > { %6238 = vst [vmem:[#allocation115_spill] sm:$0xff] %v5512_v8  ;;  %6239 = vst [vmem:[#allocation116_spill] sm:$0xff] %v5514_v60 }
 0x1c2   : > { %v5516_v10 = vpop.f32.mrf.mxu1  ;;  %v5518_v5 = vpop.f32.mrf.mxu0 }
 0x1c3   : > { %6240 = vst [vmem:[#allocation117_spill] sm:$0xff] %v5516_v10  ;;  %6241 = vst [vmem:[#allocation118_spill] sm:$0xff] %v5518_v5 }
 0x1c4   : > { %v5520_v18 = vpop.f32.mrf.mxu1  ;;  %v5522_v19 = vpop.f32.mrf.mxu0 }
 0x1c5   : > { %6242 = vst [vmem:[#allocation119_spill] sm:$0xff] %v5520_v18 }
 0x1c6   : > { %v5524_v17 = vpop.f32.mrf.mxu1  ;;  %v5526_v37 = vpop.f32.mrf.mxu0 }
 0x1c7   : > { %6243 = vst [vmem:[#allocation120_spill] sm:$0xff] %v5524_v17 }
 0x1c8   : > { %v5528_v14 = vpop.f32.mrf.mxu1  ;;  %v5530_v15 = vpop.f32.mrf.mxu0 }
 0x1c9   : > { %6244 = vst [vmem:[#allocation121_spill] sm:$0xff] %v5528_v14 }
 0x1ca   : > { %v5532_v38 = vpop.f32.mrf.mxu1  ;;  %v5534_v8 = vpop.f32.mrf.mxu0 }
 0x1cb   : > { %6245 = vst [vmem:[#allocation122_spill] sm:$0xff] %v5532_v38 }
 0x1cc   : > { %v5536_v60 = vpop.f32.mrf.mxu1  ;;  %v5538_v10 = vpop.f32.mrf.mxu0 }
 0x1cd   : > { %6246 = vst [vmem:[#allocation123_spill] sm:$0xff] %v5536_v60 }
 0x1ce   : > { %v5540_v5 = vpop.f32.mrf.mxu1  ;;  %v5542_v18 = vpop.f32.mrf.mxu0 }
 0x1cf   : > { %6247 = vst [vmem:[#allocation124_spill] sm:$0xff] %v5540_v5 }
 0x1d0   : > { %v5544_v44 = vpop.f32.mrf.mxu1  ;;  %v5546_v17 = vpop.f32.mrf.mxu0 }
 0x1d1   : > { %6248 = vst [vmem:[#allocation125_spill] sm:$0xff] %v5544_v44 }
 0x1d2   : > { %v5548_v33 = vpop.f32.mrf.mxu1  ;;  %v5550_v14 = vpop.f32.mrf.mxu0 }
 0x1d3   : > { %6249 = vst [vmem:[#allocation126_spill] sm:$0xff] %v5548_v33 }
 0x1d4   : > { %v5552_v7 = vpop.f32.mrf.mxu1  ;;  %v5554_v38 = vpop.f32.mrf.mxu0 }
 0x1d5   : > { %6250 = vst [vmem:[#allocation127_spill] sm:$0xff] %v5554_v38 }
 0x1d6   : > { %v5556_v23 = vpop.f32.mrf.mxu1  ;;  %v5558_v60 = vpop.f32.mrf.mxu0 }
 0x1d7   : > { %6251 = vst [vmem:[#allocation128_spill] sm:$0xff] %v5558_v60 }
 0x1d8   : > { %v5560_v3 = vpop.f32.mrf.mxu1  ;;  %v5562_v5 = vpop.f32.mrf.mxu0 }
 0x1d9   : > { %6252 = vst [vmem:[#allocation129_spill] sm:$0xff] %v5560_v3  ;;  %6253 = vst [vmem:[#allocation130_spill] sm:$0xff] %v5562_v5 }
 0x1da   : > { %v5564_v4 = vpop.f32.mrf.mxu1  ;;  %v5566_v44 = vpop.f32.mrf.mxu0 }
 0x1db   : > { %6254 = vst [vmem:[#allocation131_spill] sm:$0xff] %v5564_v4  ;;  %6255 = vst [vmem:[#allocation132_spill] sm:$0xff] %v5566_v44 }
 0x1dc   : > { %v5568_v48 = vpop.f32.mrf.mxu1  ;;  %v5570_v33 = vpop.f32.mrf.mxu0 }
 0x1dd   : > { %6256 = vst [vmem:[#allocation133_spill] sm:$0xff] %v5568_v48  ;;  %6257 = vst [vmem:[#allocation134_spill] sm:$0xff] %v5570_v33 }
 0x1de   : > { %v5572_v62 = vpop.f32.mrf.mxu1  ;;  %v5574_v1 = vpop.f32.mrf.mxu0 }
 0x1df   : > { %6258 = vst [vmem:[#allocation135_spill] sm:$0xff] %v5572_v62  ;;  %6259 = vst [vmem:[#allocation136_spill] sm:$0xff] %v5574_v1 }
 0x1e0   : > { %v5576_v38 = vpop.f32.mrf.mxu1  ;;  %v5578_v2 = vpop.f32.mrf.mxu0 }
 0x1e1   : > { %6260 = vst [vmem:[#allocation137_spill] sm:$0xff] %v5576_v38  ;;  %6261 = vst [vmem:[#allocation138_spill] sm:$0xff] %v5578_v2 }
 0x1e2   : > { %v5580_v60 = vpop.f32.mrf.mxu1  ;;  %v5582_v32 = vpop.f32.mrf.mxu0 }
 0x1e3   : > { %6262 = vst [vmem:[#allocation139_spill] sm:$0xff] %v5580_v60  ;;  %6263 = vst [vmem:[#allocation140_spill] sm:$0xff] %v5582_v32 }
 0x1e4   : > { %v5584_v5 = vpop.f32.mrf.mxu1  ;;  %v5586_v4 = vpop.f32.mrf.mxu0 }
 0x1e5   : > { %6264 = vst [vmem:[#allocation141_spill] sm:$0xff] %v5584_v5  ;;  %6265 = vst [vmem:[#allocation142_spill] sm:$0xff] %v5586_v4 }
 0x1e6   : > { %v5588_v44 = vpop.f32.mrf.mxu1  ;;  %v5590_v48 = vpop.f32.mrf.mxu0 }
 0x1e7   : > { %6266 = vst [vmem:[#allocation143_spill] sm:$0xff] %v5588_v44  ;;  %6267 = vst [vmem:[#allocation144_spill] sm:$0xff] %v5590_v48 }
 0x1e8   : > { %v5592_v33 = vpop.f32.mrf.mxu1  ;;  %v5594_v62 = vpop.f32.mrf.mxu0 }
 0x1e9   : > { %6268 = vst [vmem:[#allocation145_spill] sm:$0xff] %v5592_v33  ;;  %6269 = vst [vmem:[#allocation146_spill] sm:$0xff] %v5594_v62 }
 0x1ea   : > { %v5596_v1 = vpop.f32.mrf.mxu1  ;;  %v5598_v38 = vpop.f32.mrf.mxu0 }
 0x1eb   : > { %6270 = vst [vmem:[#allocation147_spill] sm:$0xff] %v5596_v1  ;;  %6271 = vst [vmem:[#allocation148_spill] sm:$0xff] %v5598_v38 }
 0x1ec   : > { %v5600_v2 = vpop.f32.mrf.mxu1  ;;  %v5602_v60 = vpop.f32.mrf.mxu0 }
 0x1ed   : > { %6272 = vst [vmem:[#allocation149_spill] sm:$0xff] %v5600_v2  ;;  %6273 = vst [vmem:[#allocation150_spill] sm:$0xff] %v5602_v60 }
 0x1ee   : > { %v5604_v32 = vpop.f32.mrf.mxu1  ;;  %v5606_v5 = vpop.f32.mrf.mxu0 }
 0x1ef   : > { %6274 = vst [vmem:[#allocation151_spill] sm:$0xff] %v5604_v32  ;;  %6275 = vst [vmem:[#allocation152_spill] sm:$0xff] %v5606_v5 }
 0x1f0   : > { %v5608_v4 = vpop.f32.mrf.mxu1  ;;  %v5610_v44 = vpop.f32.mrf.mxu0 }
 0x1f1   : > { %6276 = vst [vmem:[#allocation153_spill] sm:$0xff] %v5608_v4  ;;  %6277 = vst [vmem:[#allocation154_spill] sm:$0xff] %v5610_v44 }
 0x1f2   : > { %v5612_v48 = vpop.f32.mrf.mxu1  ;;  %v5614_v33 = vpop.f32.mrf.mxu0 }
 0x1f3   : > { %6278 = vst [vmem:[#allocation155_spill] sm:$0xff] %v5612_v48  ;;  %6279 = vst [vmem:[#allocation156_spill] sm:$0xff] %v5614_v33 }
 0x1f4   : > { %v5616_v62 = vpop.f32.mrf.mxu1  ;;  %v2966_v1 = vpop.f32.mrf.mxu0 }
 0x1f5   : > { %6280 = vst [vmem:[#allocation157_spill] sm:$0xff] %v5616_v62  ;;  %v2967_v38 = vadd.f32 %v2966_v1, %v4922_v24  ;;  %v5628_v62 = vpop.permute.xlu0 %3810 }
 0x1f6   : > { %v5619_v2 = vpop.f32.mrf.mxu1  ;;  %v2968_v60 = vpop.f32.mrf.mxu0 }
 0x1f7   : > { %v3612_v32 = vadd.f32 %v2967_v38, %v5291_v53  ;;  %v2969_v5 = vadd.f32 %v2968_v60, %v4928_v25 }
 0x1f8   : > { %v5623_v20 = vpop.f32.mrf.mxu1  ;;  %v2972_v4 = vpop.f32.mrf.mxu0 }
 0x1f9   : > { %6281 = vst [vmem:[#allocation158_spill] sm:$0xff] %v5623_v20  ;;  %v3676_v44 = vadd.f32 %v3612_v32, %v5426_v29  ;;  %v3613_v48 = vadd.f32 %v2969_v5, %v5301_v46  ;;  %v2973_v33 = vadd.f32 %v2972_v4, %v4936_v26 }
 0x1fa   : > { %v5630_v3 = vpop.f32.mrf.mxu1  ;;  %v2974_v24 = vpop.f32.mrf.mxu0 }
 0x1fb   : > { %6282 = vst [vmem:[#allocation159_spill] sm:$0xff] %v5630_v3  ;;  %v3740_v1 = vadd.f32 %v3676_v44, %v5522_v19  ;;  %v3677_v38 = vadd.f32 %v3613_v48, %v5430_v63  ;;  %v3614_v25 = vadd.f32 %v2973_v33, %v5307_v11  ;;  %v2975_v60 = vadd.f32 %v2974_v24, %v4940_v27  ;;  %v5642_v3 = vpop.permute.xlu1 %3815 }
 0x1fc   : > { %v5636_v20 = vpop.f32.mrf.mxu1  ;;  %v2978_v29 = vpop.f32.mrf.mxu0 }
 0x1fd   : > { %v3741_v5 = vadd.f32 %v3677_v38, %v5526_v37  ;;  %v3678_v26 = vadd.f32 %v3614_v25, %v5434_v31  ;;  %v3615_v4 = vadd.f32 %v2975_v60, %v5318_v34  ;;  %v3828_v32 = vadd.f32 %v5628_v62, %v3740_v1 }
 0x1fe   : > { %v2979_v44 = vadd.f32 %v2978_v29, %v4946_v28  ;;  %v5645_v48 = vpop.f32.mrf.mxu1  ;;  %v2980_v33 = vpop.f32.mrf.mxu0 }
 0x1ff   : > { %v3742_v27 = vadd.f32 %v3678_v26, %v5530_v15  ;;  %v3679_v63 = vadd.f32 %v3615_v4, %v5438_v56  ;;  %v3829_v24 = vadd.f32 %v5628_v62, %v3741_v5  ;;  %3892 = vst [vmem:[%s5652_s4] sm:$0xff] %v3828_v32  ;;  %v2981_v31 = vadd.f32 %v2980_v33, %v4951_v30 }
 0x200   : > { %v3616_v28 = vadd.f32 %v2979_v44, %v5322_v16  ;;  %v5657_v1 = vpop.f32.mrf.mxu1  ;;  %v2984_v38 = vpop.f32.mrf.mxu0 }
 0x201   : > { %v3743_v25 = vadd.f32 %v3679_v63, %v5534_v8  ;;  %3893 = vst [vmem:[%s5652_s4 + $0x8] sm:$0xff] %v3829_v24  ;;  %v3617_v56 = vadd.f32 %v2981_v31, %v5332_v13  ;;  %v3830_v60 = vadd.f32 %v5642_v3, %v3742_v27  ;;  %v2985_v29 = vadd.f32 %v2984_v38, %v4960_v35  ;;  %v5672_v63 = vpop.permute.xlu1 %3820  ;;  %v5680_v38 = vpop.permute.xlu0 %3825 }
 0x202   : > { %v3680_v5 = vadd.f32 %v3616_v28, %v5442_v39  ;;  %v5665_v26 = vpop.f32.mrf.mxu1  ;;  %v2986_v30 = vpop.f32.mrf.mxu0 }
 0x203   : > { %v3681_v4 = vadd.f32 %v3617_v56, %v5446_v41  ;;  %v3831_v32 = vadd.f32 %v5642_v3, %v3743_v25  ;;  %3894 = vst [vmem:[%s5652_s4 + $0x10] sm:$0xff] %v3830_v60  ;;  %v3618_v44 = vadd.f32 %v2985_v29, %v5336_v36  ;;  %v2987_v33 = vadd.f32 %v2986_v30, %v4969_v40 }
 0x204   : > { %v3744_v27 = vadd.f32 %v3680_v5, %v5538_v10  ;;  %v3055_v24 = vpop.f32.mrf.mxu1  ;;  %v3144_v35 = vpop.f32.mrf.mxu0 }
 0x205   : > { %v3745_v39 = vadd.f32 %v3681_v4, %v5542_v18  ;;  %3895 = vst [vmem:[%s5652_s4 + $0x18] sm:$0xff] %v3831_v32  ;;  %v3682_v31 = vadd.f32 %v3618_v44, %v5450_v6  ;;  %v3619_v41 = vadd.f32 %v2987_v33, %v5345_v59  ;;  %v3056_v28 = vadd.f32 %v3055_v24, %v4983_v45 }
 0x206   : > { %v3832_v40 = vadd.f32 %v5672_v63, %v3744_v27  ;;  %v3145_v25 = vadd.f32 %v3144_v35, %v4975_v43  ;;  %v3057_v56 = vpop.f32.mrf.mxu1  ;;  %v3146_v60 = vpop.f32.mrf.mxu0 }
 0x207   : > { %v3746_v29 = vadd.f32 %v3682_v31, %v5546_v17  ;;  %v3683_v5 = vadd.f32 %v3619_v41, %v5454_v54  ;;  %v3833_v30 = vadd.f32 %v5672_v63, %v3745_v39  ;;  %v3620_v6 = vadd.f32 %v3056_v28, %v5291_v53 }
 0x208   : > { %3896 = vst [vmem:[%s5652_s4 + $0x20] sm:$0xff] %v3832_v40  ;;  %v3628_v45 = vadd.f32 %v3145_v25, %v5293_v50  ;;  %v3058_v4 = vadd.f32 %v3057_v56, %v5000_v49  ;;  %v3147_v32 = vadd.f32 %v3146_v60, %v4994_v47  ;;  %v3061_v44 = vpop.f32.mrf.mxu1  ;;  %v3150_v43 = vpop.f32.mrf.mxu0 }
 0x209   : > { %v3747_v33 = vadd.f32 %v3683_v5, %v5550_v14  ;;  %3897 = vst [vmem:[%s5652_s4 + $0x28] sm:$0xff] %v3833_v30  ;;  %v3684_v27 = vadd.f32 %v3620_v6, %v5456_v12  ;;  %v3834_v54 = vadd.f32 %v5680_v38, %v3746_v29  ;;  %v3062_v24 = vadd.f32 %v3061_v44, %v5019_v55  ;;  %v6283_v5 = vld [vmem:[#allocation129_spill] sm:$0xff]  ;;  %v6287_v44 = vld [vmem:[#allocation8_spill] sm:$0xff] }
 0x20a   : > { %v3692_v53 = vadd.f32 %v3628_v45, %v5458_v57  ;;  %v3621_v50 = vadd.f32 %v3058_v4, %v5301_v46  ;;  %v3629_v49 = vadd.f32 %v3147_v32, %v5303_v52  ;;  %v3151_v47 = vadd.f32 %v3150_v43, %v5009_v51  ;;  %v3063_v35 = vpop.f32.mrf.mxu1  ;;  %v3152_v39 = vpop.f32.mrf.mxu0  ;;  %v6284_v6 = vld [vmem:[#allocation93_spill] sm:$0xff] }
 0x20b   : > { %v3748_v31 = vadd.f32 %v3684_v27, %v5552_v7  ;;  %v3835_v41 = vadd.f32 %v5680_v38, %v3747_v33  ;;  %3898 = vst [vmem:[%s5652_s4 + $0x30] sm:$0xff] %v3834_v54  ;;  %v3622_v12 = vadd.f32 %v3062_v24, %v5307_v11  ;;  %v3064_v55 = vadd.f32 %v3063_v35, %v5031_v61  ;;  %v6288_v24 = vld [vmem:[#allocation131_spill] sm:$0xff] }
 0x20c   : > { %v3756_v57 = vadd.f32 %v3692_v53, %v5522_v19  ;;  %v3685_v46 = vadd.f32 %v3621_v50, %v5460_v22  ;;  %v3693_v52 = vadd.f32 %v3629_v49, %v5462_v0  ;;  %v3630_v51 = vadd.f32 %v3151_v47, %v5309_v21  ;;  %v3067_v28 = vpop.f32.mrf.mxu1  ;;  %v3156_v40 = vpop.f32.mrf.mxu0  ;;  %v6289_v50 = vld [vmem:[#allocation94_spill] sm:$0xff] }
 0x20d   : > { %v3836_v25 = vadd.f32 %v5628_v62, %v3748_v31  ;;  %3899 = vst [vmem:[%s5652_s4 + $0x38] sm:$0xff] %v3835_v41  ;;  %v3686_v56 = vadd.f32 %v3622_v12, %v5464_v9  ;;  %v3623_v11 = vadd.f32 %v3064_v55, %v5318_v34  ;;  %v3153_v61 = vadd.f32 %v3152_v39, %v5027_v58  ;;  %v6285_v34 = vld [vmem:[#allocation48_spill] sm:$0xff]  ;;  %v6286_v58 = vld [vmem:[#allocation9_spill] sm:$0xff]  ;;  %v6291_v31 = vld [vmem:[#allocation11_spill] sm:$0xff] }
 0x20e   : > { %v3844_v19 = vadd.f32 %v5628_v62, %v3756_v57  ;;  %v3749_v22 = vadd.f32 %v3685_v46, %v5556_v23  ;;  %v3757_v0 = vadd.f32 %v3693_v52, %v5526_v37  ;;  %v3694_v21 = vadd.f32 %v3630_v51, %v5466_v42  ;;  %v3069_v60 = vpop.f32.mrf.mxu1  ;;  %v3158_v29 = vpop.f32.mrf.mxu0  ;;  %v6290_v39 = vld [vmem:[#allocation49_spill] sm:$0xff]  ;;  %v6292_v12 = vld [vmem:[#allocation10_spill] sm:$0xff] }
 0x20f   : > { %3900 = vst [vmem:[%s5652_s4 + $0x40] sm:$0xff] %v3836_v25  ;;  %v3750_v30 = vadd.f32 %v3686_v56, %v6283_v5  ;;  %v3687_v9 = vadd.f32 %v3623_v11, %v6284_v6  ;;  %v3631_v45 = vadd.f32 %v3153_v61, %v6285_v34  ;;  %v3068_v4 = vadd.f32 %v3067_v28, %v6286_v58  ;;  %v6293_v28 = vld [vmem:[#allocation95_spill] sm:$0xff]  ;;  %v6295_v56 = vld [vmem:[#allocation96_spill] sm:$0xff] }
 0x210   : > { %3908 = vst [vmem:[%s5652_s4 + $0x80] sm:$0xff] %v3844_v19  ;;  %v3837_v32 = vadd.f32 %v5628_v62, %v3749_v22  ;;  %v3845_v37 = vadd.f32 %v5628_v62, %v3757_v0  ;;  %v3758_v42 = vadd.f32 %v3694_v21, %v5530_v15  ;;  %v3157_v43 = vadd.f32 %v3156_v40, %v6287_v44  ;;  %v3073_v33 = vpop.f32.mrf.mxu1  ;;  %v3162_v27 = vpop.f32.mrf.mxu0  ;;  %v6294_v40 = vld [vmem:[#allocation13_spill] sm:$0xff]  ;;  %v6296_v19 = vld [vmem:[#allocation50_spill] sm:$0xff]  ;;  %v6297_v0 = vld [vmem:[#allocation12_spill] sm:$0xff] }
 0x211   : > { %v3838_v54 = vadd.f32 %v5642_v3, %v3750_v30  ;;  %v3751_v53 = vadd.f32 %v3687_v9, %v6288_v24  ;;  %v3695_v49 = vadd.f32 %v3631_v45, %v6289_v50  ;;  %v3624_v47 = vadd.f32 %v3068_v4, %v5322_v16  ;;  %v6299_v34 = vld [vmem:[#allocation15_spill] sm:$0xff]  ;;  %v6300_v4 = vld [vmem:[#allocation97_spill] sm:$0xff]  ;;  %v6304_v50 = vld [vmem:[#allocation14_spill] sm:$0xff] }
 0x212   : > { %3901 = vst [vmem:[%s5652_s4 + $0x48] sm:$0xff] %v3837_v32  ;;  %3909 = vst [vmem:[%s5652_s4 + $0x88] sm:$0xff] %v3845_v37  ;;  %v3846_v35 = vadd.f32 %v5642_v3, %v3758_v42  ;;  %v3632_v15 = vadd.f32 %v3157_v43, %v6290_v39  ;;  %v3070_v41 = vadd.f32 %v3069_v60, %v6291_v31  ;;  %v3075_v57 = vpop.f32.mrf.mxu1  ;;  %v3164_v46 = vpop.f32.mrf.mxu0  ;;  %v6301_v32 = vld [vmem:[#allocation98_spill] sm:$0xff]  ;;  %v6302_v42 = vld [vmem:[#allocation51_spill] sm:$0xff] }
 0x213   : > { %v3159_v55 = vadd.f32 %v3158_v29, %v6292_v12  ;;  %3902 = vst [vmem:[%s5652_s4 + $0x50] sm:$0xff] %v3838_v54  ;;  %v3839_v52 = vadd.f32 %v5642_v3, %v3751_v53  ;;  %v3759_v51 = vadd.f32 %v3695_v49, %v5534_v8  ;;  %v3688_v16 = vadd.f32 %v3624_v47, %v6293_v28  ;;  %v6298_v8 = vld [vmem:[#allocation133_spill] sm:$0xff]  ;;  %v6303_v54 = vld [vmem:[#allocation99_spill] sm:$0xff] }
 0x214   : > { %v3074_v25 = vadd.f32 %v3073_v33, %v6294_v40  ;;  %3910 = vst [vmem:[%s5652_s4 + $0x90] sm:$0xff] %v3846_v35  ;;  %v3696_v11 = vadd.f32 %v3632_v15, %v6295_v56  ;;  %v3625_v61 = vadd.f32 %v3070_v41, %v5332_v13  ;;  %v3163_v21 = vadd.f32 %v3162_v27, %v6297_v0  ;;  %v3233_v60 = vpop.f32.mrf.mxu1  ;;  %v3322_v29 = vpop.f32.mrf.mxu0  ;;  %v6305_v47 = vld [vmem:[#allocation135_spill] sm:$0xff]  ;;  %v6306_v15 = vld [vmem:[#allocation100_spill] sm:$0xff] }
 0x215   : > { %v3633_v22 = vadd.f32 %v3159_v55, %v6296_v19  ;;  %3903 = vst [vmem:[%s5652_s4 + $0x58] sm:$0xff] %v3839_v52  ;;  %v3847_v30 = vadd.f32 %v5642_v3, %v3759_v51  ;;  %v3752_v6 = vadd.f32 %v3688_v16, %v6298_v8  ;;  %v3076_v45 = vadd.f32 %v3075_v57, %v6299_v34  ;;  %v6307_v55 = vld [vmem:[#allocation137_spill] sm:$0xff]  ;;  %v6311_v56 = vld [vmem:[#allocation16_spill] sm:$0xff]  ;;  %v6312_v0 = vld [vmem:[#allocation139_spill] sm:$0xff] }
 0x216   : > { %v3626_v9 = vadd.f32 %v3074_v25, %v5336_v36  ;;  %v3760_v58 = vadd.f32 %v3696_v11, %v5538_v10  ;;  %v3689_v13 = vadd.f32 %v3625_v61, %v6300_v4  ;;  %v3634_v44 = vadd.f32 %v3163_v21, %v6302_v42  ;;  %v3235_v43 = vpop.f32.mrf.mxu1  ;;  %v3324_v33 = vpop.f32.mrf.mxu0  ;;  %v6308_v52 = vld [vmem:[#allocation101_spill] sm:$0xff] }
 0x217   : > { %v3697_v37 = vadd.f32 %v3633_v22, %v6301_v32  ;;  %3911 = vst [vmem:[%s5652_s4 + $0x98] sm:$0xff] %v3847_v30  ;;  %v3840_v27 = vadd.f32 %v5672_v63, %v3752_v6  ;;  %v3627_v36 = vadd.f32 %v3076_v45, %v5345_v59  ;;  %v3165_v49 = vadd.f32 %v3164_v46, %v6304_v50  ;;  %v6309_v59 = vld [vmem:[#allocation52_spill] sm:$0xff]  ;;  %v6310_v46 = vld [vmem:[#allocation17_spill] sm:$0xff]  ;;  %v6313_v30 = vld [vmem:[#allocation102_spill] sm:$0xff] }
 0x218   : > { %v3690_v53 = vadd.f32 %v3626_v9, %v6303_v54  ;;  %v3848_v10 = vadd.f32 %v5672_v63, %v3760_v58  ;;  %v3753_v35 = vadd.f32 %v3689_v13, %v6305_v47  ;;  %v3698_v31 = vadd.f32 %v3634_v44, %v6306_v15  ;;  %v3239_v41 = vpop.f32.mrf.mxu1  ;;  %v3328_v12 = vpop.f32.mrf.mxu0  ;;  %v6315_v45 = vld [vmem:[#allocation54_spill] sm:$0xff]  ;;  %v6316_v58 = vld [vmem:[#allocation19_spill] sm:$0xff]  ;;  %v6320_v50 = vld [vmem:[#allocation104_spill] sm:$0xff] }
 0x219   : > { %v3761_v39 = vadd.f32 %v3697_v37, %v5542_v18  ;;  %3904 = vst [vmem:[%s5652_s4 + $0x60] sm:$0xff] %v3840_v27  ;;  %v3691_v51 = vadd.f32 %v3627_v36, %v6308_v52  ;;  %v3635_v28 = vadd.f32 %v3165_v49, %v6309_v59  ;;  %v3234_v16 = vadd.f32 %v3233_v60, %v6310_v46  ;;  %v6314_v60 = vld [vmem:[#allocation53_spill] sm:$0xff]  ;;  %v6318_v27 = vld [vmem:[#allocation103_spill] sm:$0xff] }
 0x21a   : > { %v3754_v57 = vadd.f32 %v3690_v53, %v6307_v55  ;;  %3912 = vst [vmem:[%s5652_s4 + $0xa0] sm:$0xff] %v3848_v10  ;;  %v3841_v40 = vadd.f32 %v5672_v63, %v3753_v35  ;;  %v3762_v25 = vadd.f32 %v3698_v31, %v5546_v17  ;;  %v3323_v11 = vadd.f32 %v3322_v29, %v6311_v56  ;;  %v3241_v61 = vpop.f32.mrf.mxu1  ;;  %v3330_v19 = vpop.f32.mrf.mxu0  ;;  %v6317_v29 = vld [vmem:[#allocation18_spill] sm:$0xff]  ;;  %v6319_v53 = vld [vmem:[#allocation21_spill] sm:$0xff]  ;;  %v6321_v10 = vld [vmem:[#allocation55_spill] sm:$0xff] }
 0x21b   : > { %v3849_v18 = vadd.f32 %v5672_v63, %v3761_v39  ;;  %v3755_v21 = vadd.f32 %v3691_v51, %v6312_v0  ;;  %v3699_v6 = vadd.f32 %v3635_v28, %v6313_v30  ;;  %v3636_v9 = vadd.f32 %v3234_v16, %v6314_v60  ;;  %v6324_v51 = vld [vmem:[#allocation57_spill] sm:$0xff]  ;;  %v6326_v46 = vld [vmem:[#allocation127_spill] sm:$0xff] }
 0x21c   : > { %v3842_v22 = vadd.f32 %v5680_v38, %v3754_v57  ;;  %3905 = vst [vmem:[%s5652_s4 + $0x68] sm:$0xff] %v3841_v40  ;;  %v3850_v34 = vadd.f32 %v5680_v38, %v3762_v25  ;;  %v3644_v17 = vadd.f32 %v3323_v11, %v6315_v45  ;;  %v3236_v4 = vadd.f32 %v3235_v43, %v6316_v58  ;;  %v3245_v32 = vpop.f32.mrf.mxu1  ;;  %v3334_v37 = vpop.f32.mrf.mxu0  ;;  %v6322_v43 = vld [vmem:[#allocation56_spill] sm:$0xff]  ;;  %v6327_v40 = vld [vmem:[#allocation105_spill] sm:$0xff]  ;;  %v6328_v25 = vld [vmem:[#allocation106_spill] sm:$0xff] }
 0x21d   : > { %3913 = vst [vmem:[%s5652_s4 + $0xa8] sm:$0xff] %v3849_v18  ;;  %v3325_v13 = vadd.f32 %v3324_v33, %v6317_v29  ;;  %v3843_v42 = vadd.f32 %v5680_v38, %v3755_v21  ;;  %v3763_v44 = vadd.f32 %v3699_v6, %v5550_v14  ;;  %v3700_v54 = vadd.f32 %v3636_v9, %v6318_v27  ;;  %v6323_v33 = vld [vmem:[#allocation20_spill] sm:$0xff]  ;;  %v6329_v11 = vld [vmem:[#allocation58_spill] sm:$0xff]  ;;  %v6331_v60 = vld [vmem:[#allocation59_spill] sm:$0xff] }
 0x21e   : > { %3906 = vst [vmem:[%s5652_s4 + $0x70] sm:$0xff] %v3842_v22  ;;  %v3240_v36 = vadd.f32 %v3239_v41, %v6319_v53  ;;  %3914 = vst [vmem:[%s5652_s4 + $0xb0] sm:$0xff] %v3850_v34  ;;  %v3708_v49 = vadd.f32 %v3644_v17, %v6320_v50  ;;  %v3637_v35 = vadd.f32 %v3236_v4, %v6321_v10  ;;  %v3247_v31 = vpop.f32.mrf.mxu1  ;;  %v3336_v57 = vpop.f32.mrf.mxu0  ;;  %v6325_v41 = vld [vmem:[#allocation23_spill] sm:$0xff]  ;;  %v6333_v58 = vld [vmem:[#allocation128_spill] sm:$0xff] }
 0x21f   : > { %v3645_v39 = vadd.f32 %v3325_v13, %v6322_v43  ;;  %v3329_v15 = vadd.f32 %v3328_v12, %v6323_v33  ;;  %3907 = vst [vmem:[%s5652_s4 + $0x78] sm:$0xff] %v3843_v42  ;;  %v3851_v52 = vadd.f32 %v5680_v38, %v3763_v44  ;;  %v3764_v14 = vadd.f32 %v3700_v54, %v5552_v7  ;;  %v6330_v7 = vld [vmem:[#allocation107_spill] sm:$0xff]  ;;  %v6334_v29 = vld [vmem:[#allocation108_spill] sm:$0xff]  ;;  %v6335_v54 = vld [vmem:[#allocation109_spill] sm:$0xff] }
 0x220   : > { %v3638_v59 = vadd.f32 %v3240_v36, %v6324_v51  ;;  %v3242_v28 = vadd.f32 %v3241_v61, %v6325_v41  ;;  %v3772_v16 = vadd.f32 %v3708_v49, %v6326_v46  ;;  %v3701_v18 = vadd.f32 %v3637_v35, %v6327_v40  ;;  %v3251_v22 = vpop.f32.mrf.mxu1  ;;  %v3340_v21 = vpop.f32.mrf.mxu0  ;;  %v6332_v61 = vld [vmem:[#allocation22_spill] sm:$0xff]  ;;  %v6336_v36 = vld [vmem:[#allocation60_spill] sm:$0xff] }
 0x221   : > { %v3709_v56 = vadd.f32 %v3645_v39, %v6328_v25  ;;  %v3646_v12 = vadd.f32 %v3329_v15, %v6329_v11  ;;  %3915 = vst [vmem:[%s5652_s4 + $0xb8] sm:$0xff] %v3851_v52  ;;  %v3852_v30 = vadd.f32 %v5628_v62, %v3764_v14  ;;  %v3331_v34 = vadd.f32 %v3330_v19, %v6332_v61  ;;  %v6337_v19 = vld [vmem:[#allocation25_spill] sm:$0xff]  ;;  %v6338_v43 = vld [vmem:[#allocation130_spill] sm:$0xff]  ;;  %v6339_v33 = vld [vmem:[#allocation24_spill] sm:$0xff] }
 0x222   : > { %v3702_v6 = vadd.f32 %v3638_v59, %v6330_v7  ;;  %v3639_v9 = vadd.f32 %v3242_v28, %v6331_v60  ;;  %v3860_v45 = vadd.f32 %v5628_v62, %v3772_v16  ;;  %v3765_v17 = vadd.f32 %v3701_v18, %v5556_v23  ;;  %v3253_v42 = vpop.f32.mrf.mxu1  ;;  %v3342_v44 = vpop.f32.mrf.mxu0  ;;  %v6340_v59 = vld [vmem:[#allocation110_spill] sm:$0xff]  ;;  %v6343_v18 = vld [vmem:[#allocation27_spill] sm:$0xff]  ;;  %v6345_v7 = vld [vmem:[#allocation132_spill] sm:$0xff] }
 0x223   : > { %v3773_v4 = vadd.f32 %v3709_v56, %v6333_v58  ;;  %v3710_v13 = vadd.f32 %v3646_v12, %v6334_v29  ;;  %3916 = vst [vmem:[%s5652_s4 + $0xc0] sm:$0xff] %v3852_v30  ;;  %v3647_v49 = vadd.f32 %v3331_v34, %v6336_v36  ;;  %v3246_v10 = vadd.f32 %v3245_v32, %v6337_v19  ;;  %v6341_v32 = vld [vmem:[#allocation61_spill] sm:$0xff]  ;;  %v6342_v16 = vld [vmem:[#allocation62_spill] sm:$0xff]  ;;  %v6346_v60 = vld [vmem:[#allocation111_spill] sm:$0xff] }
 0x224   : > { %v3766_v27 = vadd.f32 %v3702_v6, %v6283_v5  ;;  %v3703_v53 = vadd.f32 %v3639_v9, %v6335_v54  ;;  %3924 = vst [vmem:[%s5652_s4 + $0x100] sm:$0xff] %v3860_v45  ;;  %v3853_v23 = vadd.f32 %v5628_v62, %v3765_v17  ;;  %v3335_v15 = vadd.f32 %v3334_v37, %v6339_v33  ;;  %v3411_v52 = vpop.f32.mrf.mxu1  ;;  %v3500_v14 = vpop.f32.mrf.mxu0  ;;  %v6344_v37 = vld [vmem:[#allocation26_spill] sm:$0xff]  ;;  %v6347_v61 = vld [vmem:[#allocation29_spill] sm:$0xff]  ;;  %v6348_v45 = vld [vmem:[#allocation112_spill] sm:$0xff] }
 0x225   : > { %v3861_v35 = vadd.f32 %v5628_v62, %v3773_v4  ;;  %v3774_v39 = vadd.f32 %v3710_v13, %v6338_v43  ;;  %v3711_v41 = vadd.f32 %v3647_v49, %v6340_v59  ;;  %v3640_v28 = vadd.f32 %v3246_v10, %v6341_v32  ;;  %v6349_v58 = vld [vmem:[#allocation63_spill] sm:$0xff]  ;;  %v6350_v4 = vld [vmem:[#allocation64_spill] sm:$0xff]  ;;  %v6352_v19 = vld [vmem:[#allocation65_spill] sm:$0xff] }
 0x226   : > { %v3854_v5 = vadd.f32 %v5642_v3, %v3766_v27  ;;  %v3767_v51 = vadd.f32 %v3703_v53, %v6288_v24  ;;  %3917 = vst [vmem:[%s5652_s4 + $0xc8] sm:$0xff] %v3853_v23  ;;  %v3648_v40 = vadd.f32 %v3335_v15, %v6342_v16  ;;  %v3248_v56 = vadd.f32 %v3247_v31, %v6343_v18  ;;  %v3413_v12 = vpop.f32.mrf.mxu1  ;;  %v3502_v30 = vpop.f32.mrf.mxu0  ;;  %v6356_v15 = vld [vmem:[#allocation114_spill] sm:$0xff] }
 0x227   : > { %3925 = vst [vmem:[%s5652_s4 + $0x108] sm:$0xff] %v3861_v35  ;;  %v3862_v46 = vadd.f32 %v5642_v3, %v3774_v39  ;;  %v3337_v11 = vadd.f32 %v3336_v57, %v6344_v37  ;;  %v3775_v6 = vadd.f32 %v3711_v41, %v6345_v7  ;;  %v3704_v9 = vadd.f32 %v3640_v28, %v6346_v60  ;;  %v6351_v57 = vld [vmem:[#allocation28_spill] sm:$0xff]  ;;  %v6354_v35 = vld [vmem:[#allocation134_spill] sm:$0xff]  ;;  %v6355_v39 = vld [vmem:[#allocation113_spill] sm:$0xff] }
 0x228   : > { %3918 = vst [vmem:[%s5652_s4 + $0xd0] sm:$0xff] %v3854_v5  ;;  %v3855_v24 = vadd.f32 %v5642_v3, %v3767_v51  ;;  %v3252_v34 = vadd.f32 %v3251_v22, %v6347_v61  ;;  %v3712_v17 = vadd.f32 %v3648_v40, %v6348_v45  ;;  %v3641_v31 = vadd.f32 %v3248_v56, %v6349_v58  ;;  %v3417_v54 = vpop.f32.mrf.mxu1  ;;  %v3506_v53 = vpop.f32.mrf.mxu0  ;;  %v6353_v22 = vld [vmem:[#allocation31_spill] sm:$0xff]  ;;  %v6357_v51 = vld [vmem:[#allocation66_spill] sm:$0xff]  ;;  %v6361_v37 = vld [vmem:[#allocation136_spill] sm:$0xff] }
 0x229   : > { %3926 = vst [vmem:[%s5652_s4 + $0x110] sm:$0xff] %v3862_v46  ;;  %v3649_v13 = vadd.f32 %v3337_v11, %v6350_v4  ;;  %v3341_v27 = vadd.f32 %v3340_v21, %v6351_v57  ;;  %v3863_v36 = vadd.f32 %v5642_v3, %v3775_v6  ;;  %v3768_v49 = vadd.f32 %v3704_v9, %v6298_v8  ;;  %v6358_v28 = vld [vmem:[#allocation115_spill] sm:$0xff]  ;;  %v6360_v40 = vld [vmem:[#allocation30_spill] sm:$0xff]  ;;  %v6363_v61 = vld [vmem:[#allocation117_spill] sm:$0xff] }
 0x22a   : > { %3919 = vst [vmem:[%s5652_s4 + $0xd8] sm:$0xff] %v3855_v24  ;;  %v3642_v10 = vadd.f32 %v3252_v34, %v6352_v19  ;;  %v3254_v23 = vadd.f32 %v3253_v42, %v6353_v22  ;;  %v3776_v43 = vadd.f32 %v3712_v17, %v6354_v35  ;;  %v3705_v33 = vadd.f32 %v3641_v31, %v6355_v39  ;;  %v3419_v41 = vpop.f32.mrf.mxu1  ;;  %v6359_v46 = vld [vmem:[#allocation67_spill] sm:$0xff]  ;;  %v6362_v24 = vld [vmem:[#allocation116_spill] sm:$0xff]  ;;  %v3508_v6 = vpop.f32.mrf.mxu0 }
 0x22b   : > { %v3713_v5 = vadd.f32 %v3649_v13, %v6356_v15  ;;  %v3650_v21 = vadd.f32 %v3341_v27, %v6357_v51  ;;  %3927 = vst [vmem:[%s5652_s4 + $0x118] sm:$0xff] %v3863_v36  ;;  %v3856_v32 = vadd.f32 %v5672_v63, %v3768_v49  ;;  %v3343_v42 = vadd.f32 %v3342_v44, %v6360_v40  ;;  %v6364_v17 = vld [vmem:[#allocation68_spill] sm:$0xff]  ;;  %v6365_v44 = vld [vmem:[#allocation33_spill] sm:$0xff]  ;;  %v6366_v13 = vld [vmem:[#allocation138_spill] sm:$0xff] }
 0x22c   : > { %v3706_v8 = vadd.f32 %v3642_v10, %v6358_v28  ;;  %v3643_v16 = vadd.f32 %v3254_v23, %v6359_v46  ;;  %v3864_v18 = vadd.f32 %v5672_v63, %v3776_v43  ;;  %v3769_v56 = vadd.f32 %v3705_v33, %v6305_v47  ;;  %v3423_v60 = vpop.f32.mrf.mxu1  ;;  %v6367_v27 = vld [vmem:[#allocation32_spill] sm:$0xff]  ;;  %v6368_v10 = vld [vmem:[#allocation118_spill] sm:$0xff]  ;;  %v6371_v33 = vld [vmem:[#allocation35_spill] sm:$0xff] }
 0x22d   : > { %v3777_v11 = vadd.f32 %v3713_v5, %v6361_v37  ;;  %v3714_v7 = vadd.f32 %v3650_v21, %v6362_v24  ;;  %3920 = vst [vmem:[%s5652_s4 + $0xe0] sm:$0xff] %v3856_v32  ;;  %v3651_v58 = vadd.f32 %v3343_v42, %v6364_v17  ;;  %v3412_v31 = vadd.f32 %v3411_v52, %v6365_v44  ;;  %v6369_v52 = vld [vmem:[#allocation69_spill] sm:$0xff]  ;;  %v6370_v43 = vld [vmem:[#allocation70_spill] sm:$0xff]  ;;  %v3512_v21 = vpop.f32.mrf.mxu0  ;;  %v6373_v28 = vld [vmem:[#allocation140_spill] sm:$0xff] }
 0x22e   : > { %v3770_v9 = vadd.f32 %v3706_v8, %v6307_v55  ;;  %v3707_v34 = vadd.f32 %v3643_v16, %v6363_v61  ;;  %3928 = vst [vmem:[%s5652_s4 + $0x120] sm:$0xff] %v3864_v18  ;;  %v3857_v47 = vadd.f32 %v5672_v63, %v3769_v56  ;;  %v3501_v36 = vadd.f32 %v3500_v14, %v6367_v27  ;;  %v5873_v49 = vpop.f32.mrf.mxu1  ;;  %v6372_v5 = vld [vmem:[#allocation34_spill] sm:$0xff]  ;;  %v6374_v46 = vld [vmem:[#allocation119_spill] sm:$0xff]  ;;  %v6375_v40 = vld [vmem:[#allocation37_spill] sm:$0xff] }
 0x22f   : > { %v3865_v4 = vadd.f32 %v5672_v63, %v3777_v11  ;;  %v3778_v57 = vadd.f32 %v3714_v7, %v6366_v13  ;;  %v3715_v22 = vadd.f32 %v3651_v58, %v6368_v10  ;;  %v3652_v23 = vadd.f32 %v3412_v31, %v6369_v52  ;;  %v6376_v56 = vld [vmem:[#allocation71_spill] sm:$0xff]  ;;  %v6380_v58 = vld [vmem:[#allocation73_spill] sm:$0xff] }
 0x230   : > { %v3858_v55 = vadd.f32 %v5680_v38, %v3770_v9  ;;  %v3771_v19 = vadd.f32 %v3707_v34, %v6312_v0  ;;  %3921 = vst [vmem:[%s5652_s4 + $0xe8] sm:$0xff] %v3857_v47  ;;  %v3660_v39 = vadd.f32 %v3501_v36, %v6370_v43  ;;  %v3414_v14 = vadd.f32 %v3413_v12, %v6371_v33  ;;  %v3429_v32 = vpop.f32.mrf.mxu1  ;;  %v6377_v12 = vld [vmem:[#allocation72_spill] sm:$0xff]  ;;  %v6379_v34 = vld [vmem:[#allocation141_spill] sm:$0xff]  ;;  %v6381_v31 = vld [vmem:[#allocation39_spill] sm:$0xff] }
 0x231   : > { %3929 = vst [vmem:[%s5652_s4 + $0x128] sm:$0xff] %v3865_v4  ;;  %v3866_v35 = vadd.f32 %v5680_v38, %v3778_v57  ;;  %v3503_v51 = vadd.f32 %v3502_v30, %v6372_v5  ;;  %v3779_v8 = vadd.f32 %v3715_v22, %v6373_v28  ;;  %v3716_v16 = vadd.f32 %v3652_v23, %v6374_v46  ;;  %v6378_v30 = vld [vmem:[#allocation36_spill] sm:$0xff]  ;;  %v6382_v47 = vld [vmem:[#allocation142_spill] sm:$0xff]  ;;  %v6385_v52 = vld [vmem:[#allocation121_spill] sm:$0xff] }
 0x232   : > { %3922 = vst [vmem:[%s5652_s4 + $0xf0] sm:$0xff] %v3858_v55  ;;  %v3859_v0 = vadd.f32 %v5680_v38, %v3771_v19  ;;  %v3418_v42 = vadd.f32 %v3417_v54, %v6375_v40  ;;  %v3724_v18 = vadd.f32 %v3660_v39, %v6320_v50  ;;  %v3653_v37 = vadd.f32 %v3414_v14, %v6376_v56  ;;  %v3431_v9 = vpop.f32.mrf.mxu1  ;;  %v6383_v50 = vld [vmem:[#allocation120_spill] sm:$0xff]  ;;  %v6384_v36 = vld [vmem:[#allocation74_spill] sm:$0xff]  ;;  %v6388_v14 = vld [vmem:[#allocation143_spill] sm:$0xff] }
 0x233   : > { %3930 = vst [vmem:[%s5652_s4 + $0x130] sm:$0xff] %v3866_v35  ;;  %v3661_v11 = vadd.f32 %v3503_v51, %v6377_v12  ;;  %v3507_v7 = vadd.f32 %v3506_v53, %v6378_v30  ;;  %v3867_v61 = vadd.f32 %v5680_v38, %v3779_v8  ;;  %v3780_v17 = vadd.f32 %v3716_v16, %v6379_v34  ;;  %v3514_v53 = vpop.f32.mrf.mxu0  ;;  %v6386_v35 = vld [vmem:[#allocation75_spill] sm:$0xff]  ;;  %v6387_v43 = vld [vmem:[#allocation38_spill] sm:$0xff]  ;;  %v6390_v16 = vld [vmem:[#allocation145_spill] sm:$0xff] }
 0x234   : > { %3923 = vst [vmem:[%s5652_s4 + $0xf8] sm:$0xff] %v3859_v0  ;;  %v3654_v44 = vadd.f32 %v3418_v42, %v6380_v58  ;;  %v3420_v54 = vadd.f32 %v3419_v41, %v6381_v31  ;;  %v3788_v4 = vadd.f32 %v3724_v18, %v6382_v47  ;;  %v3717_v13 = vadd.f32 %v3653_v37, %v6383_v50  ;;  %v5904_v19 = vpop.f32.mrf.mxu1  ;;  %v6391_v42 = vld [vmem:[#allocation122_spill] sm:$0xff]  ;;  %v6392_v56 = vld [vmem:[#allocation76_spill] sm:$0xff] }
 0x235   : > { %v3725_v57 = vadd.f32 %v3661_v11, %v6328_v25  ;;  %v3662_v55 = vadd.f32 %v3507_v7, %v6384_v36  ;;  %3931 = vst [vmem:[%s5652_s4 + $0x138] sm:$0xff] %v3867_v61  ;;  %v3868_v22 = vadd.f32 %v5628_v62, %v3780_v17  ;;  %v3509_v39 = vadd.f32 %v3508_v6, %v6387_v43  ;;  %v6389_v25 = vld [vmem:[#allocation144_spill] sm:$0xff]  ;;  %v6393_v6 = vld [vmem:[#allocation41_spill] sm:$0xff]  ;;  %v6394_v61 = vld [vmem:[#allocation146_spill] sm:$0xff]  ;;  %v3518_v58 = vpop.f32.mrf.mxu0 }
 0x236   : > { %v3718_v23 = vadd.f32 %v3654_v44, %v6385_v52  ;;  %v3655_v41 = vadd.f32 %v3420_v54, %v6386_v35  ;;  %v3876_v33 = vadd.f32 %v5628_v62, %v3788_v4  ;;  %v3781_v51 = vadd.f32 %v3717_v13, %v6388_v14  ;;  %v5915_v8 = vpop.f32.mrf.mxu1  ;;  %v6395_v34 = vld [vmem:[#allocation40_spill] sm:$0xff]  ;;  %v6396_v54 = vld [vmem:[#allocation147_spill] sm:$0xff]  ;;  %v6398_v36 = vld [vmem:[#allocation78_spill] sm:$0xff] }
 0x237   : > { %v3789_v0 = vadd.f32 %v3725_v57, %v6389_v25  ;;  %v3726_v28 = vadd.f32 %v3662_v55, %v6334_v29  ;;  %3932 = vst [vmem:[%s5652_s4 + $0x140] sm:$0xff] %v3868_v22  ;;  %v3663_v37 = vadd.f32 %v3509_v39, %v6392_v56  ;;  %v3424_v12 = vadd.f32 %v3423_v60, %v6393_v6  ;;  %v6397_v60 = vld [vmem:[#allocation77_spill] sm:$0xff]  ;;  %v6399_v22 = vld [vmem:[#allocation43_spill] sm:$0xff]  ;;  %v6406_v56 = vld [vmem:[#allocation44_spill] sm:$0xff] }
 0x238   : > { %v3782_v40 = vadd.f32 %v3718_v23, %v6390_v16  ;;  %v3719_v18 = vadd.f32 %v3655_v41, %v6391_v42  ;;  %3940 = vst [vmem:[%s5652_s4 + $0x180] sm:$0xff] %v3876_v33  ;;  %v3869_v11 = vadd.f32 %v5628_v62, %v3781_v51  ;;  %v3513_v17 = vadd.f32 %v3512_v21, %v6395_v34  ;;  %v3595_v44 = vpop.f32.mrf.mxu1  ;;  %v6400_v23 = vld [vmem:[#allocation42_spill] sm:$0xff]  ;;  %v6401_v33 = vld [vmem:[#allocation148_spill] sm:$0xff]  ;;  %v6402_v14 = vld [vmem:[#allocation123_spill] sm:$0xff] }
 0x239   : > { %v3877_v7 = vadd.f32 %v5628_v62, %v3789_v0  ;;  %v3790_v29 = vadd.f32 %v3726_v28, %v6394_v61  ;;  %v3727_v4 = vadd.f32 %v3663_v37, %v6340_v59  ;;  %v3656_v13 = vadd.f32 %v3424_v12, %v6397_v60  ;;  %v6403_v25 = vld [vmem:[#allocation45_spill] sm:$0xff]  ;;  %v6404_v16 = vld [vmem:[#allocation79_spill] sm:$0xff]  ;;  %v3520_v37 = vpop.f32.mrf.mxu0  ;;  %v6412_v60 = vld [vmem:[#allocation82_spill] sm:$0xff] }
 0x23a   : > { %v3870_v31 = vadd.f32 %v5642_v3, %v3782_v40  ;;  %v3783_v47 = vadd.f32 %v3719_v18, %v6396_v54  ;;  %3933 = vst [vmem:[%s5652_s4 + $0x148] sm:$0xff] %v3869_v11  ;;  %v3664_v55 = vadd.f32 %v3513_v17, %v6398_v36  ;;  %v3426_v21 = vadd.f32 %v5873_v49, %v6399_v22  ;;  %v3597_v41 = vpop.f32.mrf.mxu1  ;;  %v6405_v18 = vld [vmem:[#allocation80_spill] sm:$0xff]  ;;  %v6407_v11 = vld [vmem:[#allocation149_spill] sm:$0xff]  ;;  %v6414_v22 = vld [vmem:[#allocation83_spill] sm:$0xff] }
 0x23b   : > { %3941 = vst [vmem:[%s5652_s4 + $0x188] sm:$0xff] %v3877_v7  ;;  %v3878_v57 = vadd.f32 %v5642_v3, %v3790_v29  ;;  %v3515_v35 = vadd.f32 %v3514_v53, %v6400_v23  ;;  %v3791_v59 = vadd.f32 %v3727_v4, %v6401_v33  ;;  %v3720_v51 = vadd.f32 %v3656_v13, %v6402_v14  ;;  %v6408_v61 = vld [vmem:[#allocation81_spill] sm:$0xff]  ;;  %v6411_v54 = vld [vmem:[#allocation124_spill] sm:$0xff]  ;;  %v6416_v33 = vld [vmem:[#allocation151_spill] sm:$0xff] }
 0x23c   : > { %3934 = vst [vmem:[%s5652_s4 + $0x150] sm:$0xff] %v3870_v31  ;;  %v3871_v39 = vadd.f32 %v5642_v3, %v3783_v47  ;;  %v3430_v0 = vadd.f32 %v3429_v32, %v6403_v25  ;;  %v3728_v28 = vadd.f32 %v3664_v55, %v6348_v45  ;;  %v3657_v40 = vadd.f32 %v3426_v21, %v6404_v16  ;;  %v3601_v6 = vpop.f32.mrf.mxu1  ;;  %v6409_v32 = vld [vmem:[#allocation47_spill] sm:$0xff]  ;;  %v6410_v45 = vld [vmem:[#allocation150_spill] sm:$0xff]  ;;  %v6413_v36 = vld [vmem:[#allocation125_spill] sm:$0xff] }
 0x23d   : > { %3942 = vst [vmem:[%s5652_s4 + $0x190] sm:$0xff] %v3878_v57  ;;  %v3665_v49 = vadd.f32 %v3515_v35, %v6405_v18  ;;  %v3519_v53 = vadd.f32 %v3518_v58, %v6406_v56  ;;  %v3879_v12 = vadd.f32 %v5642_v3, %v3791_v59  ;;  %v3784_v7 = vadd.f32 %v3720_v51, %v6407_v11  ;;  %v6415_v35 = vld [vmem:[#allocation46_spill] sm:$0xff]  ;;  %v6417_v51 = vld [vmem:[#allocation152_spill] sm:$0xff] }
 0x23e   : > { %3935 = vst [vmem:[%s5652_s4 + $0x158] sm:$0xff] %v3871_v39  ;;  %v3658_v29 = vadd.f32 %v3430_v0, %v6408_v61  ;;  %v3432_v17 = vadd.f32 %v3431_v9, %v6409_v32  ;;  %v3792_v31 = vadd.f32 %v3728_v28, %v6410_v45  ;;  %v3721_v47 = vadd.f32 %v3657_v40, %v6411_v54  ;;  %v3603_v13 = vpop.f32.mrf.mxu1  ;;  %v6418_v0 = vld [vmem:[#allocation153_spill] sm:$0xff]  ;;  %v6419_v16 = vld [vmem:[#allocation126_spill] sm:$0xff]  ;;  %v6420_v18 = vld [vmem:[#allocation84_spill] sm:$0xff] }
 0x23f   : > { %v3729_v4 = vadd.f32 %v3665_v49, %v6356_v15  ;;  %v3666_v58 = vadd.f32 %v3519_v53, %v6412_v60  ;;  %3943 = vst [vmem:[%s5652_s4 + $0x198] sm:$0xff] %v3879_v12  ;;  %v3872_v57 = vadd.f32 %v5672_v63, %v3784_v7  ;;  %v3521_v39 = vadd.f32 %v3520_v37, %v6415_v35  ;;  %v6421_v11 = vld [vmem:[#allocation154_spill] sm:$0xff]  ;;  %v6422_v32 = vld [vmem:[#allocation155_spill] sm:$0xff] }
 0x240   : > { %v3722_v55 = vadd.f32 %v3658_v29, %v6413_v36  ;;  %v3659_v21 = vadd.f32 %v3432_v17, %v6414_v22  ;;  %v3880_v9 = vadd.f32 %v5672_v63, %v3792_v31  ;;  %v3785_v59 = vadd.f32 %v3721_v47, %v6416_v33  ;;  %v3607_v61 = vpop.f32.mrf.mxu1  ;;  %v6424_v47 = vld [vmem:[#allocation86_spill] sm:$0xff] }
 0x241   : > { %v3793_v25 = vadd.f32 %v3729_v4, %v6417_v51  ;;  %v3730_v15 = vadd.f32 %v3666_v58, %v6362_v24  ;;  %3936 = vst [vmem:[%s5652_s4 + $0x160] sm:$0xff] %v3872_v57  ;;  %v3667_v49 = vadd.f32 %v3521_v39, %v6420_v18  ;;  %v3590_v53 = vadd.f32 %v5904_v19, %v6367_v27  ;;  %v6423_v27 = vld [vmem:[#allocation85_spill] sm:$0xff]  ;;  %v6425_v58 = vld [vmem:[#allocation156_spill] sm:$0xff] }
 0x242   : > { %v3786_v28 = vadd.f32 %v3722_v55, %v6418_v0  ;;  %v3723_v40 = vadd.f32 %v3659_v21, %v6419_v16  ;;  %3944 = vst [vmem:[%s5652_s4 + $0x1a0] sm:$0xff] %v3880_v9  ;;  %v3873_v37 = vadd.f32 %v5672_v63, %v3785_v59  ;;  %v3592_v7 = vadd.f32 %v5915_v8, %v6372_v5  ;;  %v6426_v21 = vld [vmem:[#allocation87_spill] sm:$0xff]  ;;  %v6427_v9 = vld [vmem:[#allocation88_spill] sm:$0xff]  ;;  %v6429_v51 = vld [vmem:[#allocation89_spill] sm:$0xff] }
 0x243   : > { %v3881_v12 = vadd.f32 %v5672_v63, %v3793_v25  ;;  %v3794_v24 = vadd.f32 %v3730_v15, %v6421_v11  ;;  %v3731_v45 = vadd.f32 %v3667_v49, %v6368_v10  ;;  %v3668_v19 = vadd.f32 %v3590_v53, %v6423_v27  ;;  %v6430_v15 = vld [vmem:[#allocation90_spill] sm:$0xff]  ;;  %v6433_v49 = vld [vmem:[#allocation159_spill] sm:$0xff] }
 0x244   : > { %v3874_v29 = vadd.f32 %v5680_v38, %v3786_v28  ;;  %v3787_v17 = vadd.f32 %v3723_v40, %v6422_v32  ;;  %3937 = vst [vmem:[%s5652_s4 + $0x168] sm:$0xff] %v3873_v37  ;;  %v3669_v4 = vadd.f32 %v3592_v7, %v6424_v47  ;;  %v3596_v60 = vadd.f32 %v3595_v44, %v6378_v30  ;;  %v6431_v28 = vld [vmem:[#allocation91_spill] sm:$0xff] }
 0x245   : > { %3945 = vst [vmem:[%s5652_s4 + $0x1a8] sm:$0xff] %v3881_v12  ;;  %v3882_v31 = vadd.f32 %v5680_v38, %v3794_v24  ;;  %v3598_v5 = vadd.f32 %v3597_v41, %v6387_v43  ;;  %v3795_v57 = vadd.f32 %v3731_v45, %v6425_v58  ;;  %v3732_v10 = vadd.f32 %v3668_v19, %v6374_v46  ;;  %v3609_v43 = vpop.f32.mrf.mxu1  ;;  %v6428_v41 = vld [vmem:[#allocation157_spill] sm:$0xff]  ;;  %v6434_v12 = vld [vmem:[#allocation92_spill] sm:$0xff] }
 0x246   : > { %3938 = vst [vmem:[%s5652_s4 + $0x170] sm:$0xff] %v3874_v29  ;;  %v3875_v8 = vadd.f32 %v5680_v38, %v3787_v17  ;;  %v3602_v55 = vadd.f32 %v3601_v6, %v6395_v34  ;;  %v3733_v22 = vadd.f32 %v3669_v4, %v6383_v50  ;;  %v3670_v39 = vadd.f32 %v3596_v60, %v6426_v21 }
 0x247   : > { %3946 = vst [vmem:[%s5652_s4 + $0x1b0] sm:$0xff] %v3882_v31  ;;  %v3671_v33 = vadd.f32 %v3598_v5, %v6427_v9  ;;  %v3604_v30 = vadd.f32 %v3603_v13, %v6400_v23  ;;  %v3883_v44 = vadd.f32 %v5680_v38, %v3795_v57  ;;  %v3796_v59 = vadd.f32 %v3732_v10, %v6428_v41 }
 0x248   : > { %3939 = vst [vmem:[%s5652_s4 + $0x178] sm:$0xff] %v3875_v8  ;;  %v3672_v46 = vadd.f32 %v3602_v55, %v6429_v51  ;;  %v3608_v34 = vadd.f32 %v3607_v61, %v6406_v56  ;;  %v3797_v6 = vadd.f32 %v3733_v22, %v5619_v2  ;;  %v3734_v50 = vadd.f32 %v3670_v39, %v6385_v52  ;;  %v6432_v2 = vld [vmem:[#allocation158_spill] sm:$0xff] }
 0x249   : > { %v3735_v25 = vadd.f32 %v3671_v33, %v6391_v42  ;;  %v3673_v23 = vadd.f32 %v3604_v30, %v6430_v15  ;;  %3947 = vst [vmem:[%s5652_s4 + $0x1b8] sm:$0xff] %v3883_v44  ;;  %v3884_v13 = vadd.f32 %v5628_v62, %v3796_v59  ;;  %v3610_v18 = vadd.f32 %v3609_v43, %v6415_v35 }
 0x24a   : > { %v3736_v0 = vadd.f32 %v3672_v46, %v6402_v14  ;;  %v3674_v40 = vadd.f32 %v3608_v34, %v6431_v28  ;;  %v3885_v56 = vadd.f32 %v5628_v62, %v3797_v6  ;;  %v3798_v52 = vadd.f32 %v3734_v50, %v6432_v2 }
 0x24b   : > { %v3799_v42 = vadd.f32 %v3735_v25, %v6433_v49  ;;  %v3737_v53 = vadd.f32 %v3673_v23, %v6411_v54  ;;  %3948 = vst [vmem:[%s5652_s4 + $0x1c0] sm:$0xff] %v3884_v13  ;;  %v3675_v35 = vadd.f32 %v3610_v18, %v6434_v12 }
 0x24c   : > { %v3800_v14 = vadd.f32 %v3736_v0, %v5636_v20  ;;  %v3738_v37 = vadd.f32 %v3674_v40, %v6413_v36  ;;  %3949 = vst [vmem:[%s5652_s4 + $0x1c8] sm:$0xff] %v3885_v56  ;;  %v3886_v62 = vadd.f32 %v5642_v3, %v3798_v52 }
 0x24d   : > { %v3887_v11 = vadd.f32 %v5642_v3, %v3799_v42  ;;  %v3801_v24 = vadd.f32 %v3737_v53, %v5645_v48  ;;  %v3739_v20 = vadd.f32 %v3675_v35, %v6419_v16 }
 0x24e   : > { %v3888_v7 = vadd.f32 %v5672_v63, %v3800_v14  ;;  %v3802_v54 = vadd.f32 %v3738_v37, %v5657_v1  ;;  %3950 = vst [vmem:[%s5652_s4 + $0x1d0] sm:$0xff] %v3886_v62 }
 0x24f   : > { %3951 = vst [vmem:[%s5652_s4 + $0x1d8] sm:$0xff] %v3887_v11  ;;  %v3889_v36 = vadd.f32 %v5672_v63, %v3801_v24  ;;  %v3803_v48 = vadd.f32 %v3739_v20, %v5665_v26 }
 0x250   : > { %3952 = vst [vmem:[%s5652_s4 + $0x1e0] sm:$0xff] %v3888_v7  ;;  %v3890_v3 = vadd.f32 %v5680_v38, %v3802_v54 }
 0x251   : > { %3953 = vst [vmem:[%s5652_s4 + $0x1e8] sm:$0xff] %v3889_v36  ;;  %v3891_v1 = vadd.f32 %v5680_v38, %v3803_v48 }
 0x252   : > { %3954 = vst [vmem:[%s5652_s4 + $0x1f0] sm:$0xff] %v3890_v3 }
 0x253   : > { %3955 = vst [vmem:[%s5652_s4 + $0x1f8] sm:$0xff] %v3891_v1 }
 0x254   : > { %4379 = shalt.err (!%p4376_p6)
}
 0x255   : > { %s4380_s5 = scalar_lea.hbm %s6039_s19, 8192  ;;  %s4384_s8 = scalar_lea.hbm %s6095_s3, 16384 }
 0x256   : > { %p4381_p7 = scmp.ne.s32.totalorder %s6039_s19, %s4380_s5  ;;  %p4385_p13 = scmp.lt.s32.totalorder %s6039_s19, %s6095_s3 }
 0x257   : > { %p4386_p2 = scmp.lt.s32.totalorder %s4384_s8, %s4380_s5 }
 0x258   : > { %p4382_p10 = pnand %p4381_p7, %p4531_p9 }
 0x259   : > { %p4387_p8 = por %p4386_p2, %p4385_p13 }
 0x25a   : > { %p4383_p4 = pneg %p4382_p10 }
 0x25c   : > { %p4388_p12 = pnand %p4387_p8, %p4383_p4 }
 0x25e   : > { %4391 = shalt.err (!%p4388_p12)
}
 0x25f   : > { %s4458_s4 = smov 256   ;;  %s4459_s29 = smov 16  }
 0x260   : > { %4266 = dma.vmem_to_hbm [thread:$0]  (%p4531_p9), %s6041_s10, 8192, %s6039_s19, %s3957_s15, %s4458_s4, %s4458_s4, %s4459_s29  }
 0x261 PF: > { %s3987_s11 = sand.u32 1, %s4426_s12   ;;  %p6435_p0 = scmp.ge.s32.totalorder %s4446_s17, 2 }
 0x262   : > { %s3988_s18 = scalar_lea.sflag [#allocation4], %s3987_s11 }
 0x263   : > { %p4273_p1 = pnand %p6435_p0, %p4538_p11 }
 0x265   : > { %p4274_p3 = pneg %p4273_p1 }
 0x267   : > { %4421 = dma.done.wait (%p4274_p3), %s3988_s18, 8192  }
 0x268   : > { %4423 = vsyncadd (%p4274_p3), %s3988_s18, 4294959104  ;;  %s19_s17 = sadd.s32 1, %s4446_s17   ;;  %s6436_s12 = smov %s4430_s13 }
 0x269   : > { %p16_p5 = scmp.ge.s32.totalorder %s19_s17, 4   ;;  %s6437_s13 = smov %s4434_s14 }
 0x26a   : > { %s6438_s14 = smov %s4536_s26  ;;  %s6439_s15 = smov %s4442_s16 }
 0x26b   : > { %s6440_s16 = smov %s6442_s20  ;;  %18 = sbr.rel (!%p16_p5) target bundleno = 6 (0x6), region = 77 }
 0x270   :  { %3993 = vsyncpa [#allocation3], 1 }
 0x271   :  { %3995 = vsyncpa [#allocation3 + $0x1], 1 }
 0x272   :  { %3996 = vsyncpa [#allocation4], 1 }
 0x273   :  { %3998 = vsyncpa [#allocation4 + $0x1], 1 }

</bundles_post_ra>
